<compile_context>
chip_gen: v7x
topology: tpu7x:2x2x1
jax: 0.10.0
libtpu: 0.0.40
codegen_flags: <defaults>
</compile_context>

<pallas_src>
import functools

import jax
import jax.numpy as jnp
from jax.experimental import pallas as pl
from jax.experimental.pallas import tpu as pltpu


# --------------------------------------------------------------------------- #
# Fused kernel: one grid step = (one batch group, one ResBlock).
# --------------------------------------------------------------------------- #
def resblocks_kernel(x_ref, w_ref, b_ref, m_ref, out_ref, slab_ref,
                     *, C, NB, N, W, eps, res_scale):
    """
    x_ref    : (C, NB*N)          input activation (only read at block k==0)
    w_ref    : (2*nblocks, C, 9C) packed conv weights, VMEM-resident all grid
    b_ref    : (2*nblocks, C, 1)  conv biases, VMEM-resident all grid
    m_ref    : (9, NB*N)          per-tap validity masks (zero-pad + roll wrap)
    out_ref  : (C, NB*N)          resident running activation / final output
    slab_ref : (9C, NB*N)         scratch: im2col slab for the depth-9C matmul
    """
    NN = NB * N
    k = pl.program_id(1)

    # Seed the resident activation at the first block of each batch group.
    @pl.when(k == 0)
    def _():
        out_ref[...] = x_ref[...]

    cur = out_ref[...].astype(jnp.float32)                       # (C, NN)

    def conv3x3(act, ci):
        # im2col via XLU rolls: slab row-block `tap` holds x[:, h+dy, w+dx],
        # zeroed where the tap falls outside the image (which also covers every
        # column where the roll wrapped around the lane axis or crossed a batch
        # segment).  One fused (C,9C)x(9C,NN) MXU matmul then does the conv.
        for tap in range(9):
            ky, kx = divmod(tap, 3)
            d = (ky - 1) * W + (kx - 1)
            if d == 0:
                shifted = act
            else:
                shifted = pltpu.roll(act, (-d) % NN, axis=1) * m_ref[tap:tap + 1, :]
            slab_ref[tap * C:(tap + 1) * C, :] = shifted          # aligned store
        idx = 2 * k + ci
        y = jnp.dot(w_ref[idx], slab_ref[...],
                    preferred_element_type=jnp.float32)           # (C, NN)
        return y + b_ref[idx]                                     # bias (C, 1)

    def inorm(y):
        # Single pass: E[y] and E[y^2] together; rsqrt on the EUP slot.
        inv_n = jnp.float32(1.0 / N)
        segs = []
        for bseg in range(NB):                                    # per-instance stats
            seg = y[:, bseg * N:(bseg + 1) * N]                   # lane-aligned slice
            mu = jnp.sum(seg, axis=1, keepdims=True) * inv_n
            ex2 = jnp.sum(seg * seg, axis=1, keepdims=True) * inv_n
            var = ex2 - mu * mu
            segs.append((seg - mu) * jax.lax.rsqrt(var + eps))
        return segs[0] if NB == 1 else jnp.concatenate(segs, axis=1)

    h = jnp.maximum(inorm(conv3x3(cur, 0)), 0.0)                  # conv + IN + ReLU
    h = inorm(conv3x3(h, 1))                                      # conv + IN
    out_ref[...] = (cur + res_scale * h).astype(out_ref.dtype)


# --------------------------------------------------------------------------- #
# Wrapper
# --------------------------------------------------------------------------- #
def resblocks_forward(x, params, *, res_scale=0.1, eps=1e-5, batch_per_step=1):
    B, C, H, W = x.shape
    N = H * W
    NB = batch_per_step
    assert B % NB == 0, "batch_per_step must divide the batch"
    G = B // NB
    NN = NB * N

    w = params["w"]          # (num_blocks, 2, C_out, C_in, 3, 3)  torch conv layout
    b = params["b"]          # (num_blocks, 2, C)
    num_blocks = w.shape[0]

    # ---- parameter / layout prep (plain JAX glue, outside the kernel) ----
    # (nb,2,O,I,ky,kx) -> (nb,2,O,ky,kx,I) -> (nb*2, C, 9C): contraction axis
    # ordered (ky, kx, cin) to match the slab row layout tap*C + cin.
    w_p = jnp.transpose(w, (0, 1, 2, 4, 5, 3)).reshape(num_blocks * 2, C, 9 * C)
    b_p = b.reshape(num_blocks * 2, C, 1)

    # Activation: (G, C, NB*N) — each batch element occupies a contiguous,
    # 128-aligned lane segment (raw NCHW flatten when NB == 1).
    x_g = x.reshape(G, NB, C, N).transpose(0, 2, 1, 3).reshape(G, C, NN)

    # Per-tap validity masks: zero any tap that falls outside the image.  These
    # also kill every column whose rolled read wrapped around the lane axis or
    # crossed a batch-segment boundary.
    hh = jnp.arange(N, dtype=jnp.int32) // W
    ww = jnp.arange(N, dtype=jnp.int32) % W
    rows = []
    for tap in range(9):
        ky, kx = divmod(tap, 3)
        dy, dx = ky - 1, kx - 1
        valid = ((hh + dy >= 0) & (hh + dy <= H - 1) &
                 (ww + dx >= 0) & (ww + dx <= W - 1))
        rows.append(valid.astype(jnp.float32))
    masks = jnp.tile(jnp.stack(rows, axis=0), (1, NB))            # (9, NB*N)

    kernel = functools.partial(resblocks_kernel, C=C, NB=NB, N=N, W=W,
                               eps=eps, res_scale=res_scale)

    out_g = pl.pallas_call(
        kernel,
        grid=(G, num_blocks),
        in_specs=[
            # activation: block index constant along k -> fetched once per group
            pl.BlockSpec((None, C, NN), lambda g, k: (g, 0, 0)),
            # all-block weights/biases/masks: constant index_map -> VMEM-resident
            pl.BlockSpec((num_blocks * 2, C, 9 * C), lambda g, k: (0, 0, 0)),
            pl.BlockSpec((num_blocks * 2, C, 1), lambda g, k: (0, 0, 0)),
            pl.BlockSpec((9, NN), lambda g, k: (0, 0)),
        ],
        out_specs=pl.BlockSpec((None, C, NN), lambda g, k: (g, 0, 0)),
        out_shape=jax.ShapeDtypeStruct((G, C, NN), x.dtype),
        scratch_shapes=[pltpu.VMEM((9 * C, NN), jnp.float32)],
        input_output_aliases={0: 0},      # reuse the activation HBM buffer
        compiler_params=pltpu.CompilerParams(
            dimension_semantics=("parallel", "arbitrary")),
    )(x_g, w_p, b_p, masks)

    return out_g.reshape(G, C, NB, N).transpose(0, 2, 1, 3).reshape(B, C, H, W)


# --------------------------------------------------------------------------- #
# Pure-JAX reference (mirrors the PyTorch forward) for verification.
# --------------------------------------------------------------------------- #
def reference_forward(x, params, *, res_scale=0.1, eps=1e-5):
    w, b = params["w"], params["b"]

    def conv(h, wk, bk):
        y = jax.lax.conv_general_dilated(
            h, wk, window_strides=(1, 1), padding=((1, 1), (1, 1)),
            dimension_numbers=("NCHW", "OIHW", "NCHW"),
            precision=jax.lax.Precision.HIGHEST)
        return y + bk[None, :, None, None]

    def inorm(y):
        mu = jnp.mean(y, axis=(2, 3), keepdims=True)
        var = jnp.mean((y - mu) ** 2, axis=(2, 3), keepdims=True)
        return (y - mu) * jax.lax.rsqrt(var + eps)

    out = x
    for n in range(w.shape[0]):
        h = jax.nn.relu(inorm(conv(out, w[n, 0], b[n, 0])))
        h = inorm(conv(h, w[n, 1], b[n, 1]))
        out = out + res_scale * h
    return out


# --------------------------------------------------------------------------- #
def make_params(key, num_blocks, dim):
    k1, k2 = jax.random.split(key)
    return {
        "w": 0.1 * jax.random.normal(k1, (num_blocks, 2, dim, dim, 3, 3),
                                     jnp.float32),
        "b": 0.1 * jax.random.normal(k2, (num_blocks, 2, dim), jnp.float32),
    }


if __name__ == "__main__":
    B, dim, H = 2, 32, 16
    W = H
    num_blocks = 2

    key = jax.random.PRNGKey(0)
    kx_, kp_ = jax.random.split(key)
    x = jax.random.normal(kx_, (B, dim, H, W), jnp.float32)
    params = make_params(kp_, num_blocks, dim)

    ref = reference_forward(x, params)

    # v7x-style: batch is the leading "parallel" grid axis (one element per TC).
    out = jax.block_until_ready(resblocks_forward(x, params, batch_per_step=1))
    assert out.shape == (B, dim, H, W)
    err = float(jnp.max(jnp.abs(out - ref)))
    assert jnp.allclose(out, ref, rtol=2e-2, atol=2e-2), err

    # v5e/v6e-style: fold the whole batch onto the lane axis (fewer, fatter steps).
    out2 = jax.block_until_ready(resblocks_forward(x, params, batch_per_step=B))
    err2 = float(jnp.max(jnp.abs(out2 - ref)))
    assert jnp.allclose(out2, ref, rtol=2e-2, atol=2e-2), err2

    print("KERNEL_OK")
</pallas_src>

<mosaic_0001>
module attributes {stable_mosaic.version = 11 : i64} {
  func.func @resblocks_kernel(%arg0: i32, %arg1: i32, %arg2: memref<1x32x256xf32, #tpu.memory_space<vmem>>, %arg3: memref<4x32x288xf32, #tpu.memory_space<vmem>>, %arg4: memref<4x32x1xf32, #tpu.memory_space<vmem>>, %arg5: memref<9x256xf32, #tpu.memory_space<vmem>>, %arg6: memref<1x32x256xf32, #tpu.memory_space<vmem>>, %arg7: memref<288x256xf32, #tpu.memory_space<vmem>>) attributes {dimension_semantics = [#tpu.dimension_semantics<parallel>, #tpu.dimension_semantics<arbitrary>], iteration_bounds = array<i64: 2, 2>, scalar_prefetch = 0 : i64, scratch_operands = 1 : i64, tpu.core_type = #tpu.core_type<tc>, window_params = [{transform_indices = @transform_0, window_bounds = array<i64: 1, 32, 256>}, {pipeline_mode = #tpu.pipeline_mode<synchronous>, transform_indices = @transform_1, window_bounds = array<i64: 4, 32, 288>}, {pipeline_mode = #tpu.pipeline_mode<synchronous>, transform_indices = @transform_2, window_bounds = array<i64: 4, 32, 1>}, {pipeline_mode = #tpu.pipeline_mode<synchronous>, transform_indices = @transform_3, window_bounds = array<i64: 9, 256>}, {transform_indices = @transform_4, window_bounds = array<i64: 1, 32, 256>}]} {
    %c0_i32 = arith.constant 0 : i32
    %0 = arith.cmpi eq, %arg1, %c0_i32 : i32
    %1 = arith.extui %0 : i1 to i32
    %c0_i32_0 = arith.constant 0 : i32
    %2 = arith.cmpi ne, %1, %c0_i32_0 : i32
    scf.if %2 {
      %c0_95 = arith.constant 0 : index
      %c0_96 = arith.constant 0 : index
      %c0_97 = arith.constant 0 : index
      %155 = vector.load %arg2[%c0_95, %c0_96, %c0_97] : memref<1x32x256xf32, #tpu.memory_space<vmem>>, vector<1x32x256xf32>
      %156 = vector.shape_cast %155 : vector<1x32x256xf32> to vector<32x256xf32>
      %c0_98 = arith.constant 0 : index
      %c0_99 = arith.constant 0 : index
      %c0_100 = arith.constant 0 : index
      %157 = vector.load %arg6[%c0_98, %c0_99, %c0_100] : memref<1x32x256xf32, #tpu.memory_space<vmem>>, vector<1x32x256xf32>
      %158 = vector.shape_cast %157 : vector<1x32x256xf32> to vector<32x256xf32>
      %159 = vector.shape_cast %156 : vector<32x256xf32> to vector<1x32x256xf32>
      tpu.vector_store %arg6[%c0_98, %c0_99, %c0_100], %159 {strides = array<i32>} : memref<1x32x256xf32, #tpu.memory_space<vmem>>, vector<1x32x256xf32>,
    } else {
    }
    %c0 = arith.constant 0 : index
    %c0_1 = arith.constant 0 : index
    %c0_2 = arith.constant 0 : index
    %3 = vector.load %arg6[%c0, %c0_1, %c0_2] : memref<1x32x256xf32, #tpu.memory_space<vmem>>, vector<1x32x256xf32>
    %4 = vector.shape_cast %3 : vector<1x32x256xf32> to vector<32x256xf32>
    %c17_i32 = arith.constant 17 : i32
    %5 = tpu.dynamic_rotate %4 by %c17_i32 dim 1 : vector<32x256xf32>, i32 -> vector<32x256xf32>
    %c0_3 = arith.constant 0 : index
    %c0_4 = arith.constant 0 : index
    %6 = vector.load %arg5[%c0_3, %c0_4] : memref<9x256xf32, #tpu.memory_space<vmem>>, vector<1x256xf32>
    %7 = vector.broadcast %6 : vector<1x256xf32> to vector<32x256xf32>
    %8 = arith.mulf %5, %7 : vector<32x256xf32>
    %c0_5 = arith.constant 0 : index
    %c0_6 = arith.constant 0 : index
    %9 = vector.load %arg7[%c0_5, %c0_6] : memref<288x256xf32, #tpu.memory_space<vmem>>, vector<32x256xf32>
    tpu.vector_store %arg7[%c0_5, %c0_6], %8 {strides = array<i32>} : memref<288x256xf32, #tpu.memory_space<vmem>>, vector<32x256xf32>,
    %c16_i32 = arith.constant 16 : i32
    %10 = tpu.dynamic_rotate %4 by %c16_i32 dim 1 : vector<32x256xf32>, i32 -> vector<32x256xf32>
    %c1 = arith.constant 1 : index
    %c0_7 = arith.constant 0 : index
    %11 = vector.load %arg5[%c1, %c0_7] : memref<9x256xf32, #tpu.memory_space<vmem>>, vector<1x256xf32>
    %12 = vector.broadcast %11 : vector<1x256xf32> to vector<32x256xf32>
    %13 = arith.mulf %10, %12 : vector<32x256xf32>
    %c32 = arith.constant 32 : index
    %c0_8 = arith.constant 0 : index
    %14 = vector.load %arg7[%c32, %c0_8] : memref<288x256xf32, #tpu.memory_space<vmem>>, vector<32x256xf32>
    tpu.vector_store %arg7[%c32, %c0_8], %13 {strides = array<i32>} : memref<288x256xf32, #tpu.memory_space<vmem>>, vector<32x256xf32>,
    %c15_i32 = arith.constant 15 : i32
    %15 = tpu.dynamic_rotate %4 by %c15_i32 dim 1 : vector<32x256xf32>, i32 -> vector<32x256xf32>
    %c2 = arith.constant 2 : index
    %c0_9 = arith.constant 0 : index
    %16 = vector.load %arg5[%c2, %c0_9] : memref<9x256xf32, #tpu.memory_space<vmem>>, vector<1x256xf32>
    %17 = vector.broadcast %16 : vector<1x256xf32> to vector<32x256xf32>
    %18 = arith.mulf %15, %17 : vector<32x256xf32>
    %c64 = arith.constant 64 : index
    %c0_10 = arith.constant 0 : index
    %19 = vector.load %arg7[%c64, %c0_10] : memref<288x256xf32, #tpu.memory_space<vmem>>, vector<32x256xf32>
    tpu.vector_store %arg7[%c64, %c0_10], %18 {strides = array<i32>} : memref<288x256xf32, #tpu.memory_space<vmem>>, vector<32x256xf32>,
    %c1_i32 = arith.constant 1 : i32
    %20 = tpu.dynamic_rotate %4 by %c1_i32 dim 1 : vector<32x256xf32>, i32 -> vector<32x256xf32>
    %c3 = arith.constant 3 : index
    %c0_11 = arith.constant 0 : index
    %21 = vector.load %arg5[%c3, %c0_11] : memref<9x256xf32, #tpu.memory_space<vmem>>, vector<1x256xf32>
    %22 = vector.broadcast %21 : vector<1x256xf32> to vector<32x256xf32>
    %23 = arith.mulf %20, %22 : vector<32x256xf32>
    %c96 = arith.constant 96 : index
    %c0_12 = arith.constant 0 : index
    %24 = vector.load %arg7[%c96, %c0_12] : memref<288x256xf32, #tpu.memory_space<vmem>>, vector<32x256xf32>
    tpu.vector_store %arg7[%c96, %c0_12], %23 {strides = array<i32>} : memref<288x256xf32, #tpu.memory_space<vmem>>, vector<32x256xf32>,
    %c128 = arith.constant 128 : index
    %c0_13 = arith.constant 0 : index
    %25 = vector.load %arg7[%c128, %c0_13] : memref<288x256xf32, #tpu.memory_space<vmem>>, vector<32x256xf32>
    tpu.vector_store %arg7[%c128, %c0_13], %4 {strides = array<i32>} : memref<288x256xf32, #tpu.memory_space<vmem>>, vector<32x256xf32>,
    %c255_i32 = arith.constant 255 : i32
    %26 = tpu.dynamic_rotate %4 by %c255_i32 dim 1 : vector<32x256xf32>, i32 -> vector<32x256xf32>
    %c5 = arith.constant 5 : index
    %c0_14 = arith.constant 0 : index
    %27 = vector.load %arg5[%c5, %c0_14] : memref<9x256xf32, #tpu.memory_space<vmem>>, vector<1x256xf32>
    %28 = vector.broadcast %27 : vector<1x256xf32> to vector<32x256xf32>
    %29 = arith.mulf %26, %28 : vector<32x256xf32>
    %c160 = arith.constant 160 : index
    %c0_15 = arith.constant 0 : index
    %30 = vector.load %arg7[%c160, %c0_15] : memref<288x256xf32, #tpu.memory_space<vmem>>, vector<32x256xf32>
    tpu.vector_store %arg7[%c160, %c0_15], %29 {strides = array<i32>} : memref<288x256xf32, #tpu.memory_space<vmem>>, vector<32x256xf32>,
    %c241_i32 = arith.constant 241 : i32
    %31 = tpu.dynamic_rotate %4 by %c241_i32 dim 1 : vector<32x256xf32>, i32 -> vector<32x256xf32>
    %c6 = arith.constant 6 : index
    %c0_16 = arith.constant 0 : index
    %32 = vector.load %arg5[%c6, %c0_16] : memref<9x256xf32, #tpu.memory_space<vmem>>, vector<1x256xf32>
    %33 = vector.broadcast %32 : vector<1x256xf32> to vector<32x256xf32>
    %34 = arith.mulf %31, %33 : vector<32x256xf32>
    %c192 = arith.constant 192 : index
    %c0_17 = arith.constant 0 : index
    %35 = vector.load %arg7[%c192, %c0_17] : memref<288x256xf32, #tpu.memory_space<vmem>>, vector<32x256xf32>
    tpu.vector_store %arg7[%c192, %c0_17], %34 {strides = array<i32>} : memref<288x256xf32, #tpu.memory_space<vmem>>, vector<32x256xf32>,
    %c240_i32 = arith.constant 240 : i32
    %36 = tpu.dynamic_rotate %4 by %c240_i32 dim 1 : vector<32x256xf32>, i32 -> vector<32x256xf32>
    %c7 = arith.constant 7 : index
    %c0_18 = arith.constant 0 : index
    %37 = vector.load %arg5[%c7, %c0_18] : memref<9x256xf32, #tpu.memory_space<vmem>>, vector<1x256xf32>
    %38 = vector.broadcast %37 : vector<1x256xf32> to vector<32x256xf32>
    %39 = arith.mulf %36, %38 : vector<32x256xf32>
    %c224 = arith.constant 224 : index
    %c0_19 = arith.constant 0 : index
    %40 = vector.load %arg7[%c224, %c0_19] : memref<288x256xf32, #tpu.memory_space<vmem>>, vector<32x256xf32>
    tpu.vector_store %arg7[%c224, %c0_19], %39 {strides = array<i32>} : memref<288x256xf32, #tpu.memory_space<vmem>>, vector<32x256xf32>,
    %c239_i32 = arith.constant 239 : i32
    %41 = tpu.dynamic_rotate %4 by %c239_i32 dim 1 : vector<32x256xf32>, i32 -> vector<32x256xf32>
    %c8 = arith.constant 8 : index
    %c0_20 = arith.constant 0 : index
    %42 = vector.load %arg5[%c8, %c0_20] : memref<9x256xf32, #tpu.memory_space<vmem>>, vector<1x256xf32>
    %43 = vector.broadcast %42 : vector<1x256xf32> to vector<32x256xf32>
    %44 = arith.mulf %41, %43 : vector<32x256xf32>
    %c256 = arith.constant 256 : index
    %c0_21 = arith.constant 0 : index
    %45 = vector.load %arg7[%c256, %c0_21] : memref<288x256xf32, #tpu.memory_space<vmem>>, vector<32x256xf32>
    tpu.vector_store %arg7[%c256, %c0_21], %44 {strides = array<i32>} : memref<288x256xf32, #tpu.memory_space<vmem>>, vector<32x256xf32>,
    %c2_i32 = arith.constant 2 : i32
    %46 = arith.muli %c2_i32, %arg1 : i32
    %c0_i32_22 = arith.constant 0 : i32
    %47 = arith.addi %46, %c0_i32_22 : i32
    %48 = arith.index_cast %47 : i32 to index
    %c0_23 = arith.constant 0 : index
    %c0_24 = arith.constant 0 : index
    %49 = vector.load %arg3[%48, %c0_23, %c0_24] : memref<4x32x288xf32, #tpu.memory_space<vmem>>, vector<1x32x288xf32>
    %50 = vector.shape_cast %49 : vector<1x32x288xf32> to vector<32x288xf32>
    %c0_25 = arith.constant 0 : index
    %c0_26 = arith.constant 0 : index
    %51 = vector.load %arg7[%c0_25, %c0_26] : memref<288x256xf32, #tpu.memory_space<vmem>>, vector<288x256xf32>
    %cst = arith.constant dense<0.000000e+00> : vector<32x256xf32>
    %52 = tpu.matmul %50, %51, %cst {dimension_numbers = #tpu.dot_dimension_numbers<[1], [0], [0], [1], [0, 0, 1, 1], [], []>} : vector<32x288xf32>, vector<288x256xf32>, vector<32x256xf32> -> vector<32x256xf32>
    %53 = arith.index_cast %47 : i32 to index
    %c0_27 = arith.constant 0 : index
    %c0_28 = arith.constant 0 : index
    %54 = vector.load %arg4[%53, %c0_27, %c0_28] : memref<4x32x1xf32, #tpu.memory_space<vmem>>, vector<1x32x1xf32>
    %55 = vector.shape_cast %54 : vector<1x32x1xf32> to vector<32x1xf32>
    %56 = vector.broadcast %55 : vector<32x1xf32> to vector<32x256xf32>
    %57 = arith.addf %52, %56 : vector<32x256xf32>
    %cst_29 = arith.constant dense<0.000000e+00> : vector<32xf32>
    %58 = vector.multi_reduction <add>, %57, %cst_29 [1] : vector<32x256xf32> to vector<32xf32>
    %59 = vector.shape_cast %58 : vector<32xf32> to vector<32x1xf32>
    %cst_30 = arith.constant 3.906250e-03 : f32
    %60 = vector.broadcast %cst_30 : f32 to vector<32x1xf32>
    %61 = arith.mulf %59, %60 : vector<32x1xf32>
    %62 = arith.mulf %57, %57 : vector<32x256xf32>
    %cst_31 = arith.constant dense<0.000000e+00> : vector<32xf32>
    %63 = vector.multi_reduction <add>, %62, %cst_31 [1] : vector<32x256xf32> to vector<32xf32>
    %64 = vector.shape_cast %63 : vector<32xf32> to vector<32x1xf32>
    %cst_32 = arith.constant 3.906250e-03 : f32
    %65 = vector.broadcast %cst_32 : f32 to vector<32x1xf32>
    %66 = arith.mulf %64, %65 : vector<32x1xf32>
    %67 = arith.mulf %61, %61 : vector<32x1xf32>
    %68 = arith.subf %66, %67 : vector<32x1xf32>
    %69 = vector.broadcast %61 : vector<32x1xf32> to vector<32x256xf32>
    %70 = arith.subf %57, %69 : vector<32x256xf32>
    %cst_33 = arith.constant 9.99999974E-6 : f32
    %71 = vector.broadcast %cst_33 : f32 to vector<32x1xf32>
    %72 = arith.addf %68, %71 : vector<32x1xf32>
    %73 = math.rsqrt %72 : vector<32x1xf32>
    %74 = vector.broadcast %73 : vector<32x1xf32> to vector<32x256xf32>
    %75 = arith.mulf %70, %74 : vector<32x256xf32>
    %cst_34 = arith.constant 0.000000e+00 : f32
    %76 = vector.broadcast %cst_34 : f32 to vector<32x256xf32>
    %77 = arith.maximumf %75, %76 : vector<32x256xf32>
    %c17_i32_35 = arith.constant 17 : i32
    %78 = tpu.dynamic_rotate %77 by %c17_i32_35 dim 1 : vector<32x256xf32>, i32 -> vector<32x256xf32>
    %c0_36 = arith.constant 0 : index
    %c0_37 = arith.constant 0 : index
    %79 = vector.load %arg5[%c0_36, %c0_37] : memref<9x256xf32, #tpu.memory_space<vmem>>, vector<1x256xf32>
    %80 = vector.broadcast %79 : vector<1x256xf32> to vector<32x256xf32>
    %81 = arith.mulf %78, %80 : vector<32x256xf32>
    %c0_38 = arith.constant 0 : index
    %c0_39 = arith.constant 0 : index
    %82 = vector.load %arg7[%c0_38, %c0_39] : memref<288x256xf32, #tpu.memory_space<vmem>>, vector<32x256xf32>
    tpu.vector_store %arg7[%c0_38, %c0_39], %81 {strides = array<i32>} : memref<288x256xf32, #tpu.memory_space<vmem>>, vector<32x256xf32>,
    %c16_i32_40 = arith.constant 16 : i32
    %83 = tpu.dynamic_rotate %77 by %c16_i32_40 dim 1 : vector<32x256xf32>, i32 -> vector<32x256xf32>
    %c1_41 = arith.constant 1 : index
    %c0_42 = arith.constant 0 : index
    %84 = vector.load %arg5[%c1_41, %c0_42] : memref<9x256xf32, #tpu.memory_space<vmem>>, vector<1x256xf32>
    %85 = vector.broadcast %84 : vector<1x256xf32> to vector<32x256xf32>
    %86 = arith.mulf %83, %85 : vector<32x256xf32>
    %c32_43 = arith.constant 32 : index
    %c0_44 = arith.constant 0 : index
    %87 = vector.load %arg7[%c32_43, %c0_44] : memref<288x256xf32, #tpu.memory_space<vmem>>, vector<32x256xf32>
    tpu.vector_store %arg7[%c32_43, %c0_44], %86 {strides = array<i32>} : memref<288x256xf32, #tpu.memory_space<vmem>>, vector<32x256xf32>,
    %c15_i32_45 = arith.constant 15 : i32
    %88 = tpu.dynamic_rotate %77 by %c15_i32_45 dim 1 : vector<32x256xf32>, i32 -> vector<32x256xf32>
    %c2_46 = arith.constant 2 : index
    %c0_47 = arith.constant 0 : index
    %89 = vector.load %arg5[%c2_46, %c0_47] : memref<9x256xf32, #tpu.memory_space<vmem>>, vector<1x256xf32>
    %90 = vector.broadcast %89 : vector<1x256xf32> to vector<32x256xf32>
    %91 = arith.mulf %88, %90 : vector<32x256xf32>
    %c64_48 = arith.constant 64 : index
    %c0_49 = arith.constant 0 : index
    %92 = vector.load %arg7[%c64_48, %c0_49] : memref<288x256xf32, #tpu.memory_space<vmem>>, vector<32x256xf32>
    tpu.vector_store %arg7[%c64_48, %c0_49], %91 {strides = array<i32>} : memref<288x256xf32, #tpu.memory_space<vmem>>, vector<32x256xf32>,
    %c1_i32_50 = arith.constant 1 : i32
    %93 = tpu.dynamic_rotate %77 by %c1_i32_50 dim 1 : vector<32x256xf32>, i32 -> vector<32x256xf32>
    %c3_51 = arith.constant 3 : index
    %c0_52 = arith.constant 0 : index
    %94 = vector.load %arg5[%c3_51, %c0_52] : memref<9x256xf32, #tpu.memory_space<vmem>>, vector<1x256xf32>
    %95 = vector.broadcast %94 : vector<1x256xf32> to vector<32x256xf32>
    %96 = arith.mulf %93, %95 : vector<32x256xf32>
    %c96_53 = arith.constant 96 : index
    %c0_54 = arith.constant 0 : index
    %97 = vector.load %arg7[%c96_53, %c0_54] : memref<288x256xf32, #tpu.memory_space<vmem>>, vector<32x256xf32>
    tpu.vector_store %arg7[%c96_53, %c0_54], %96 {strides = array<i32>} : memref<288x256xf32, #tpu.memory_space<vmem>>, vector<32x256xf32>,
    %c128_55 = arith.constant 128 : index
    %c0_56 = arith.constant 0 : index
    %98 = vector.load %arg7[%c128_55, %c0_56] : memref<288x256xf32, #tpu.memory_space<vmem>>, vector<32x256xf32>
    tpu.vector_store %arg7[%c128_55, %c0_56], %77 {strides = array<i32>} : memref<288x256xf32, #tpu.memory_space<vmem>>, vector<32x256xf32>,
    %c255_i32_57 = arith.constant 255 : i32
    %99 = tpu.dynamic_rotate %77 by %c255_i32_57 dim 1 : vector<32x256xf32>, i32 -> vector<32x256xf32>
    %c5_58 = arith.constant 5 : index
    %c0_59 = arith.constant 0 : index
    %100 = vector.load %arg5[%c5_58, %c0_59] : memref<9x256xf32, #tpu.memory_space<vmem>>, vector<1x256xf32>
    %101 = vector.broadcast %100 : vector<1x256xf32> to vector<32x256xf32>
    %102 = arith.mulf %99, %101 : vector<32x256xf32>
    %c160_60 = arith.constant 160 : index
    %c0_61 = arith.constant 0 : index
    %103 = vector.load %arg7[%c160_60, %c0_61] : memref<288x256xf32, #tpu.memory_space<vmem>>, vector<32x256xf32>
    tpu.vector_store %arg7[%c160_60, %c0_61], %102 {strides = array<i32>} : memref<288x256xf32, #tpu.memory_space<vmem>>, vector<32x256xf32>,
    %c241_i32_62 = arith.constant 241 : i32
    %104 = tpu.dynamic_rotate %77 by %c241_i32_62 dim 1 : vector<32x256xf32>, i32 -> vector<32x256xf32>
    %c6_63 = arith.constant 6 : index
    %c0_64 = arith.constant 0 : index
    %105 = vector.load %arg5[%c6_63, %c0_64] : memref<9x256xf32, #tpu.memory_space<vmem>>, vector<1x256xf32>
    %106 = vector.broadcast %105 : vector<1x256xf32> to vector<32x256xf32>
    %107 = arith.mulf %104, %106 : vector<32x256xf32>
    %c192_65 = arith.constant 192 : index
    %c0_66 = arith.constant 0 : index
    %108 = vector.load %arg7[%c192_65, %c0_66] : memref<288x256xf32, #tpu.memory_space<vmem>>, vector<32x256xf32>
    tpu.vector_store %arg7[%c192_65, %c0_66], %107 {strides = array<i32>} : memref<288x256xf32, #tpu.memory_space<vmem>>, vector<32x256xf32>,
    %c240_i32_67 = arith.constant 240 : i32
    %109 = tpu.dynamic_rotate %77 by %c240_i32_67 dim 1 : vector<32x256xf32>, i32 -> vector<32x256xf32>
    %c7_68 = arith.constant 7 : index
    %c0_69 = arith.constant 0 : index
    %110 = vector.load %arg5[%c7_68, %c0_69] : memref<9x256xf32, #tpu.memory_space<vmem>>, vector<1x256xf32>
    %111 = vector.broadcast %110 : vector<1x256xf32> to vector<32x256xf32>
    %112 = arith.mulf %109, %111 : vector<32x256xf32>
    %c224_70 = arith.constant 224 : index
    %c0_71 = arith.constant 0 : index
    %113 = vector.load %arg7[%c224_70, %c0_71] : memref<288x256xf32, #tpu.memory_space<vmem>>, vector<32x256xf32>
    tpu.vector_store %arg7[%c224_70, %c0_71], %112 {strides = array<i32>} : memref<288x256xf32, #tpu.memory_space<vmem>>, vector<32x256xf32>,
    %c239_i32_72 = arith.constant 239 : i32
    %114 = tpu.dynamic_rotate %77 by %c239_i32_72 dim 1 : vector<32x256xf32>, i32 -> vector<32x256xf32>
    %c8_73 = arith.constant 8 : index
    %c0_74 = arith.constant 0 : index
    %115 = vector.load %arg5[%c8_73, %c0_74] : memref<9x256xf32, #tpu.memory_space<vmem>>, vector<1x256xf32>
    %116 = vector.broadcast %115 : vector<1x256xf32> to vector<32x256xf32>
    %117 = arith.mulf %114, %116 : vector<32x256xf32>
    %c256_75 = arith.constant 256 : index
    %c0_76 = arith.constant 0 : index
    %118 = vector.load %arg7[%c256_75, %c0_76] : memref<288x256xf32, #tpu.memory_space<vmem>>, vector<32x256xf32>
    tpu.vector_store %arg7[%c256_75, %c0_76], %117 {strides = array<i32>} : memref<288x256xf32, #tpu.memory_space<vmem>>, vector<32x256xf32>,
    %c2_i32_77 = arith.constant 2 : i32
    %119 = arith.muli %c2_i32_77, %arg1 : i32
    %c1_i32_78 = arith.constant 1 : i32
    %120 = arith.addi %119, %c1_i32_78 : i32
    %121 = arith.index_cast %120 : i32 to index
    %c0_79 = arith.constant 0 : index
    %c0_80 = arith.constant 0 : index
    %122 = vector.load %arg3[%121, %c0_79, %c0_80] : memref<4x32x288xf32, #tpu.memory_space<vmem>>, vector<1x32x288xf32>
    %123 = vector.shape_cast %122 : vector<1x32x288xf32> to vector<32x288xf32>
    %c0_81 = arith.constant 0 : index
    %c0_82 = arith.constant 0 : index
    %124 = vector.load %arg7[%c0_81, %c0_82] : memref<288x256xf32, #tpu.memory_space<vmem>>, vector<288x256xf32>
    %cst_83 = arith.constant dense<0.000000e+00> : vector<32x256xf32>
    %125 = tpu.matmul %123, %124, %cst_83 {dimension_numbers = #tpu.dot_dimension_numbers<[1], [0], [0], [1], [0, 0, 1, 1], [], []>} : vector<32x288xf32>, vector<288x256xf32>, vector<32x256xf32> -> vector<32x256xf32>
    %126 = arith.index_cast %120 : i32 to index
    %c0_84 = arith.constant 0 : index
    %c0_85 = arith.constant 0 : index
    %127 = vector.load %arg4[%126, %c0_84, %c0_85] : memref<4x32x1xf32, #tpu.memory_space<vmem>>, vector<1x32x1xf32>
    %128 = vector.shape_cast %127 : vector<1x32x1xf32> to vector<32x1xf32>
    %129 = vector.broadcast %128 : vector<32x1xf32> to vector<32x256xf32>
    %130 = arith.addf %125, %129 : vector<32x256xf32>
    %cst_86 = arith.constant dense<0.000000e+00> : vector<32xf32>
    %131 = vector.multi_reduction <add>, %130, %cst_86 [1] : vector<32x256xf32> to vector<32xf32>
    %132 = vector.shape_cast %131 : vector<32xf32> to vector<32x1xf32>
    %cst_87 = arith.constant 3.906250e-03 : f32
    %133 = vector.broadcast %cst_87 : f32 to vector<32x1xf32>
    %134 = arith.mulf %132, %133 : vector<32x1xf32>
    %135 = arith.mulf %130, %130 : vector<32x256xf32>
    %cst_88 = arith.constant dense<0.000000e+00> : vector<32xf32>
    %136 = vector.multi_reduction <add>, %135, %cst_88 [1] : vector<32x256xf32> to vector<32xf32>
    %137 = vector.shape_cast %136 : vector<32xf32> to vector<32x1xf32>
    %cst_89 = arith.constant 3.906250e-03 : f32
    %138 = vector.broadcast %cst_89 : f32 to vector<32x1xf32>
    %139 = arith.mulf %137, %138 : vector<32x1xf32>
    %140 = arith.mulf %134, %134 : vector<32x1xf32>
    %141 = arith.subf %139, %140 : vector<32x1xf32>
    %142 = vector.broadcast %134 : vector<32x1xf32> to vector<32x256xf32>
    %143 = arith.subf %130, %142 : vector<32x256xf32>
    %cst_90 = arith.constant 9.99999974E-6 : f32
    %144 = vector.broadcast %cst_90 : f32 to vector<32x1xf32>
    %145 = arith.addf %141, %144 : vector<32x1xf32>
    %146 = math.rsqrt %145 : vector<32x1xf32>
    %147 = vector.broadcast %146 : vector<32x1xf32> to vector<32x256xf32>
    %148 = arith.mulf %143, %147 : vector<32x256xf32>
    %cst_91 = arith.constant 1.000000e-01 : f32
    %149 = vector.broadcast %cst_91 : f32 to vector<32x256xf32>
    %150 = arith.mulf %149, %148 : vector<32x256xf32>
    %151 = arith.addf %4, %150 : vector<32x256xf32>
    %c0_92 = arith.constant 0 : index
    %c0_93 = arith.constant 0 : index
    %c0_94 = arith.constant 0 : index
    %152 = vector.load %arg6[%c0_92, %c0_93, %c0_94] : memref<1x32x256xf32, #tpu.memory_space<vmem>>, vector<1x32x256xf32>
    %153 = vector.shape_cast %152 : vector<1x32x256xf32> to vector<32x256xf32>
    %154 = vector.shape_cast %151 : vector<32x256xf32> to vector<1x32x256xf32>
    tpu.vector_store %arg6[%c0_92, %c0_93, %c0_94], %154 {strides = array<i32>} : memref<1x32x256xf32, #tpu.memory_space<vmem>>, vector<1x32x256xf32>,
    return
  }
  func.func @transform_0(%arg0: i32, %arg1: i32) -> (i32, i32, i32) {
    %c0_i32 = arith.constant 0 : i32
    %c0_i32_0 = arith.constant 0 : i32
    %c0_i32_1 = arith.constant 0 : i32
    return %arg0, %c0_i32, %c0_i32_0 : i32, i32, i32
  }
  func.func @transform_1(%arg0: i32, %arg1: i32) -> (i32, i32, i32) {
    %c0_i32 = arith.constant 0 : i32
    %c0_i32_0 = arith.constant 0 : i32
    %c0_i32_1 = arith.constant 0 : i32
    %c0_i32_2 = arith.constant 0 : i32
    return %c0_i32, %c0_i32_0, %c0_i32_1 : i32, i32, i32
  }
  func.func @transform_2(%arg0: i32, %arg1: i32) -> (i32, i32, i32) {
    %c0_i32 = arith.constant 0 : i32
    %c0_i32_0 = arith.constant 0 : i32
    %c0_i32_1 = arith.constant 0 : i32
    %c0_i32_2 = arith.constant 0 : i32
    return %c0_i32, %c0_i32_0, %c0_i32_1 : i32, i32, i32
  }
  func.func @transform_3(%arg0: i32, %arg1: i32) -> (i32, i32) {
    %c0_i32 = arith.constant 0 : i32
    %c0_i32_0 = arith.constant 0 : i32
    %c0_i32_1 = arith.constant 0 : i32
    return %c0_i32, %c0_i32_0 : i32, i32
  }
  func.func @transform_4(%arg0: i32, %arg1: i32) -> (i32, i32, i32) {
    %c0_i32 = arith.constant 0 : i32
    %c0_i32_0 = arith.constant 0 : i32
    %c0_i32_1 = arith.constant 0 : i32
    return %arg0, %c0_i32, %c0_i32_0 : i32, i32, i32
  }
}

</mosaic_0001>

<bundles_post_ra>
// kernel: tpu_custom_call.1
= control target key start
LH: loop header
LB: loop body
LE: loop exit
PB: predicated region body
PF: predicated region fallthrough
CT: control target
= control target key end

     0   :  { %s3707_s0 = inlined_call_operand.hbm [shape: f32[2,32,256], index: 0, kind: input, shape index: {}, may-alias: {0,4}]   ;;  %s3708_s1 = inlined_call_operand.vmem [shape: f32[4,32,288], index: 1, kind: input, shape index: {}]   ;;  %s3709_s2 = inlined_call_operand.vmem [shape: f32[4,32,1], index: 2, kind: input, shape index: {}]   ;;  %s3710_s3 = inlined_call_operand.hbm [shape: f32[9,256], index: 3, kind: input, shape index: {}]   ;;  %s3711_s4 = inlined_call_operand.hbm [shape: f32[2,32,256], index: 4, kind: output, shape index: {}, may-alias: {0,4}]  }
   0x1   :  { %3720 = sst [smem:[#allocation12_spill]] %s3710_s3 }
   0x2   :  { %9 = vsyncpa [#allocation4], 0 }
   0x3   :  { %11 = vsyncpa [#allocation4 + $0x1], 0 }
   0x4   :  { %12 = vsyncpa [#allocation7], 0 }
   0x5   :  { %13 = vsyncpa [#allocation5], 0 }
   0x6   :  { %15 = vsyncpa [#allocation5 + $0x1], 0  ;;  %s2603_s15 = smov 0   ;;  %s2605_s16 = smov 0  }
   0x7   :  { %s2607_s17 = smov 0   ;;  %s2609_s18 = smov 0  }
   0x8   :  { %s2611_s19 = smov 0   ;;  %s2613_s20 = smov 0  }
   0x9   :  { %s2615_s21 = smov 0   ;;  %s2617_s22 = smov 0  }
   0xa LB: > { %s2041_s23 = sadd.s32 4294967295, %s2560_s22   ;;  %s2042_s24 = sadd.s32 4294967294, %s2560_s22   ;;  %s2560_s22 = sphi %s2617_s22, %s21_s22   ;;  %s2556_s21 = sphi %s2615_s21, %s3744_s21   ;;  %s2552_s20 = sphi %s2613_s20, %s3743_s20   ;;  %s2548_s19 = sphi %s2611_s19, %s3742_s19   ;;  %s2544_s18 = sphi %s2609_s18, %s3741_s18   ;;  %s2540_s17 = sphi %s2607_s17, %s3740_s17   ;;  %s2536_s16 = sphi %s2605_s16, %s3739_s16   ;;  %s2532_s15 = sphi %s2603_s15, %s3738_s15  }
   0xb   : > { %p53_p0 = scmp.ne.s32.totalorder %s2536_s16, %s2532_s15  ;;  %p2647_p1 = scmp.eq.s32.totalorder %s2041_s23, 0 }
   0xc   : > { %p2651_p2 = scmp.eq.s32.totalorder %s2041_s23, 3  ;;  %p146_p3 = scmp.eq.s32.totalorder %s2042_s24, 3 }
   0xd   : > { %s3721_s25 = scalar_select %p2647_p1, 1, 0 }
   0xe   : > { %s3722_s26 = scalar_select %p2651_p2, 1, 0 }
   0xf   : > { %p2657_p4 = por %p2647_p1, %p53_p0  ;;  %p2043_p5 = scmp.ge.s32.totalorder %s2560_s22, 1 }
  0x10   : > { %p2662_p6 = por %p146_p3, %p53_p0  ;;  %p153_p7 = scmp.lt.s32.totalorder %s2560_s22, 5 }
  0x11   : > { %s3723_s27 = scalar_select %p2657_p4, 1, 0 }
  0x12   : > { %s3724_s28 = scalar_select %p2662_p6, 1, 0 }
  0x13   : > { %p2667_p8 = pnand %p2043_p5, %p153_p7  ;;  %s2562_s30 = smov [#allocation6]  }
  0x14   : > { %s171_s5 = sshll.u32 %s2562_s30, 4  ;;  %s3727_s3 = sld [smem:[#allocation12_spill]]  ;;  %s172_s5 = int_to_ptr.vmem [resolvable:$true] %s171_s5 }
  0x15   : > { %s3725_s29 = scalar_select %p2667_p8, 1, 0 }
  0x16   : > { %p2280_p9 = pneg %p2667_p8 }
  0x18   : > { %p2675_p10 = pnand %p2280_p9, %p2647_p1 }
  0x1a   : > { %s2400_s9 = scalar_lea.hbm %s3727_s3, 512  ;;  %p2402_p12 = pneg %p2675_p10 }
  0x1b   : > { %p2401_p11 = scmp.ne.s32.totalorder %s3727_s3, %s2400_s9  ;;  %p2407_p3 = scmp.lt.u32.totalorder %s2400_s9, %s3727_s3 }
  0x1d   : > { %p2403_p13 = pnand %p2402_p12, %p2401_p11 }
  0x1f   : > { %p2404_p0 = pneg %p2403_p13 }
  0x21   : > { %p2409_p5 = pnand %p2407_p3, %p2404_p0 }
  0x23   : > { %2412 = shalt.err (!%p2409_p5)
}
  0x24   : > { %s2413_s14 = scalar_lea.vmem %s172_s5, 512  ;;  %p2421_p1 = scmp.lt.s32.totalorder %s172_s5, %s172_s5 }
  0x25   : > { %p2414_p7 = scmp.ne.s32.totalorder %s172_s5, %s2413_s14  ;;  %p2422_p4 = scmp.lt.s32.totalorder %s2413_s14, %s2413_s14 }
  0x27   : > { %p2416_p9 = pnand %p2414_p7, %p2402_p12  ;;  %p2423_p8 = por %p2422_p4, %p2421_p1 }
  0x29   : > { %p2417_p6 = pneg %p2416_p9 }
  0x2b   : > { %p2424_p2 = pnand %p2423_p8, %p2417_p6 }
  0x2d   : > { %2427 = shalt.err (!%p2424_p2)
}
  0x2e   : > { %s3716_s23 = smov 256   ;;  %s3717_s24 = smov 16  }
  0x2f   : > { %2283 = dma.hbm_to_vmem [thread:$0]  (!%p2675_p10), %s3727_s3, 512, %s172_s5, [#allocation7], %s3716_s23, %s3716_s23, %s3717_s24  }
  0x30   : > { %s30_s8 = sadd.s32 1, %s2552_s20  ;;  %s33_s9 = sadd.s32 1, %s2556_s21 }
  0x31   : > { %p31_p1 = scmp.ge.s32.totalorder %s30_s8, 2  ;;  %s40_s10 = sadd.s32 1, %s2540_s17 }
  0x32   : > { %p47_p2 = scmp.ne.s32.totalorder %s2540_s17, %s2536_s16  ;;  %p48_p4 = scmp.eq.s32.totalorder %s2560_s22, 0 }
  0x33   : > { %s3746_s8 = smov (%p31_p1, %s30_s8), 0  ;;  %s3748_s9 = smov (!%p31_p1, %s33_s9), %s2556_s21 }
  0x34   : > { %p3728_p6 = scmp.ne.s32.totalorder %s3722_s26, 0  ;;  %p35_p11 = scmp.ge.s32.totalorder %s3748_s9, 2 }
  0x35   : > { %p2293_p10 = scmp.lt.s32.totalorder %s2560_s22, 4  ;;  %p49_p12 = por %p48_p4, %p47_p2 }
  0x36   : > { %p2709_p8 = por %p3728_p6, %p47_p2  ;;  %s185_s5 = sand.u32 1, %s2540_s17  }
  0x37   : > { %s3750_s9 = smov (%p35_p11, %s3748_s9), 0  ;;  %s2046_s11 = sshll.u32 %s185_s5, 6 }
  0x38   : > { %s37_s12 = ssub.s32 %s2556_s21, %s3750_s9  ;;  %s2091_s13 = sshll.u32 %s2556_s21, 10 }
  0x39   : > { %p38_p13 = scmp.eq.s32.totalorder %s37_s12, 0  ;;  %s2723_s26 = scalar_lea.hbm %s3707_s0, %s2091_s13 }
  0x3a   : > { %s189_s7 = scalar_lea.vmem [#allocation3], %s2046_s11  ;;  %p2732_p0 = pnand %p2293_p10, %p49_p12 }
  0x3b   : > { %s196_s23 = sshll.u32 %s189_s7, 4  ;;  %s2736_s12 = scalar_lea.sflag [#allocation4], %s185_s5  ;;  %s2728_s23 = int_to_ptr.vmem [resolvable:$true] %s196_s23 }
  0x3c   : > { %s2726_s24 = scalar_select %p38_p13, %s2540_s17, %s40_s10  }
  0x3d   : > { %s2428_s13 = scalar_lea.hbm %s2723_s26, 1024  ;;  %p2430_p5 = pneg %p2732_p0 }
  0x3e   : > { %p2429_p3 = scmp.ne.s32.totalorder %s2723_s26, %s2428_s13  ;;  %s2433_s14 = scalar_lea.hbm %s3707_s0, 2048 }
  0x3f   : > { %p2434_p1 = scmp.lt.u32.totalorder %s2723_s26, %s3707_s0  ;;  %p2435_p2 = scmp.lt.u32.totalorder %s2433_s14, %s2428_s13 }
  0x40   : > { %p2431_p7 = pnand %p2430_p5, %p2429_p3  ;;  %p2437_p6 = scmp.lt.u32.totalorder %s2428_s13, %s2723_s26 }
  0x41   : > { %p2436_p4 = por %p2435_p2, %p2434_p1 }
  0x42   : > { %p2432_p9 = pneg %p2431_p7 }
  0x43   : > { %p2438_p11 = por %p2437_p6, %p2436_p4 }
  0x45   : > { %p2439_p10 = pnand %p2438_p11, %p2432_p9 }
  0x47   : > { %2442 = shalt.err (!%p2439_p10)
}
  0x48   : > { %s2443_s5 = scalar_lea.vmem %s2728_s23, 1024  ;;  %s2565_s10 = smov [#allocation3]  }
  0x49   : > { %p2444_p12 = scmp.ne.s32.totalorder %s2728_s23, %s2443_s5  ;;  %s2448_s11 = sshll.u32 %s2565_s10, 4  ;;  %s2449_s11 = int_to_ptr.vmem [resolvable:$false] %s2448_s11 }
  0x4a   : > { %s2450_s30 = scalar_lea.vmem %s2449_s11, 2048  ;;  %p2451_p7 = scmp.lt.s32.totalorder %s2728_s23, %s2449_s11 }
  0x4b   : > { %p2446_p13 = pnand %p2444_p12, %p2430_p5  ;;  %p2452_p1 = scmp.lt.s32.totalorder %s2450_s30, %s2443_s5 }
  0x4d   : > { %p2447_p3 = pneg %p2446_p13  ;;  %p2453_p2 = por %p2452_p1, %p2451_p7 }
  0x4f   : > { %p2454_p4 = pnand %p2453_p2, %p2447_p3 }
  0x51   : > { %2457 = shalt.err (!%p2454_p4)
}
  0x52   : > { %s3731_s13 = smov 16   ;;  %s3732_s14 = smov 256  }
  0x53   : > { %2287 = dma.hbm_to_vmem [thread:$0]  (!%p2732_p0), %s2723_s26, 1024, %s2728_s23, %s2736_s12, %s3732_s14, %s3732_s14, %s3731_s13  }
  0x54   : > { %p3733_p5 = scmp.ne.s32.totalorder %s3725_s29, 0 }
  0x55   : > { %s2770_s7 = sand.u32 (!%p3733_p5), 1, %s2536_s16   ;;  %p3734_p9 = scmp.ne.s32.totalorder (!%p3733_p5), %s3723_s27, 0 }
  0x56   : > { %208 = sbr.rel (%p3733_p5) target bundleno = 1400 (0x578), region = 36  ;;  %s2050_s5 = sshll.u32 (!%p3733_p5), %s2770_s7, 6 }
  0x57   : > { %s211_s10 = scalar_lea.sflag (!%p3733_p5), [#allocation4], %s2770_s7  ;;  %s214_s11 = scalar_lea.vmem (!%p3733_p5), [#allocation3], %s2050_s5 }
  0x5d   : > { %2519 = dma.done.wait (%p3734_p9), %s211_s10, 1024  }
  0x5e   : > { %2521 = vsyncadd (%p3734_p9), %s211_s10, 4294966272  ;;  %p3735_p6 = scmp.ne.s32.totalorder %s3721_s25, 0 }
  0x60   : > { %2523 = dma.done.wait (%p3735_p6), [#allocation7], 512  }
  0x61   : > { %2525 = vsyncadd (%p3735_p6), [#allocation7], 4294966784  ;;  %s2782_s3 = scalar_lea.vmem [#allocation8], %s2050_s5  ;;  %p2053_p0 = scmp.ne.s32.totalorder %s2544_s18, 0 }
  0x62   : > { %v247_v0 = vld [vmem:[%s214_s11] sm:$0xff] (!%p2053_p0)  ;;  %v248_v1 = vld [vmem:[%s214_s11 + $0x8] sm:$0xff] (!%p2053_p0)  ;;  %v249_v2 = vld [vmem:[%s214_s11 + $0x10] sm:$0xff] (!%p2053_p0) }
  0x63   : > { %246 = sbr.rel (%p2053_p0) target bundleno = 106 (0x6a), region = 48  ;;  %255 = vst [vmem:[%s2782_s3] sm:$0xff] (!%p2053_p0), %v247_v0  ;;  %256 = vst [vmem:[%s2782_s3 + $0x8] sm:$0xff] (!%p2053_p0), %v248_v1  ;;  %v250_v3 = vld [vmem:[%s214_s11 + $0x18] sm:$0xff] (!%p2053_p0)  ;;  %v251_v4 = vld [vmem:[%s214_s11 + $0x20] sm:$0xff] (!%p2053_p0) }
  0x64   : > { %257 = vst [vmem:[%s2782_s3 + $0x10] sm:$0xff] (!%p2053_p0), %v249_v2  ;;  %v252_v5 = vld [vmem:[%s214_s11 + $0x28] sm:$0xff] (!%p2053_p0)  ;;  %258 = vst [vmem:[%s2782_s3 + $0x18] sm:$0xff] (!%p2053_p0), %v250_v3  ;;  %v253_v6 = vld [vmem:[%s214_s11 + $0x30] sm:$0xff] (!%p2053_p0) }
  0x65   : > { %259 = vst [vmem:[%s2782_s3 + $0x20] sm:$0xff] (!%p2053_p0), %v251_v4  ;;  %260 = vst [vmem:[%s2782_s3 + $0x28] sm:$0xff] (!%p2053_p0), %v252_v5  ;;  %v254_v7 = vld [vmem:[%s214_s11 + $0x38] sm:$0xff] (!%p2053_p0) }
  0x66   : > { %261 = vst [vmem:[%s2782_s3 + $0x30] sm:$0xff] (!%p2053_p0), %v253_v6  ;;  %262 = vst [vmem:[%s2782_s3 + $0x38] sm:$0xff] (!%p2053_p0), %v254_v7 }
  0x6a PF: > { %v2794_v8 = vld [vmem:[%s2782_s3 + $0x8] sm:$0xff]  ;;  %v2797_v9 = vld [vmem:[%s2782_s3] sm:$0xff]  ;;  %s2566_s25 = smov 17   ;;  %s2567_s27 = smov 16   ;;  %v287_v16 = vlaneseq  ;;  %v2574_v58 = vmov 0   ;;  %vm826_vm8 = vcmask 261120  }
  0x6b   : > { %279 = vrot.lane.b32.xlu1 %v2794_v8, %s2566_s25  ;;  %271 = vrot.lane.b32.xlu0 %v2797_v9, %s2566_s25  ;;  %v2804_v10 = vld [vmem:[%s2782_s3 + $0x18] sm:$0xff]  ;;  %v2807_v11 = vld [vmem:[%s2782_s3 + $0x10] sm:$0xff]  ;;  %s2568_s29 = smov 15   ;;  %s2569_s23 = smov 1  }
  0x6c   : > { %v2817_v13 = vld [vmem:[%s2782_s3 + $0x20] sm:$0xff]  ;;  %v2827_v15 = vld [vmem:[%s2782_s3 + $0x28] sm:$0xff]  ;;  %s2570_s26 = smov 127   ;;  %s2571_s12 = smov 113   ;;  %v301_v18 = vshrl.u32 %v287_v16, 7  ;;  %v2936_v19 = vand.u32 127, %v287_v16  ;;  %2374 = vset.pattern.permute.xlu0 %v2574_v58  ;;  %2375 = vset.pattern.permute.xlu1 %v2574_v58 }
  0x6d   : > { %v2814_v12 = vld [vmem:[%s2782_s3 + $0x30] sm:$0xff]  ;;  %v2824_v14 = vld [vmem:[%s2782_s3 + $0x38] sm:$0xff]  ;;  %s2572_s30 = smov 112   ;;  %s2092_s13 = smul.u32 192, %s2544_s18 }
  0x6e   : > { %v2938_v20 = vsub.s32 1, %v301_v18  ;;  %s3718_s11 = smov 111   ;;  %v2944_v21 = vsub.s32 0, %v301_v18  ;;  %v298_v22 = vld [vmem:[#allocation6] ss:$8 sm:$0x3] }
  0x6f   : > { %281 = vrot.lane.b32.xlu1 %v2804_v10, %s2566_s25  ;;  %273 = vrot.lane.b32.xlu0 %v2807_v11, %s2566_s25  ;;  %s2925_s10 = scalar_lea.vmem %s3708_s1, %s2092_s13  ;;  %vm289_vm0 = vcmp.lt.s32.totalorder %v2936_v19, 17  ;;  %v352_v51 = vld [vmem:[#allocation6 + $0x1] ss:$8 sm:$0x3]  ;;  %vm342_vm1 = vcmp.lt.s32.totalorder %v2936_v19, 16  ;;  %s2093_s13 = sshll.u32 %s2544_s18, 6 }
  0x70   : > { %v717_v17 = vld [vmem:[%s2925_s10 + $0x8] sm:$0xff]  ;;  %v307_v25 = vrot.slane %v298_v22, %v2938_v20  ;;  %v303_v27 = vrot.slane %v298_v22, %v2944_v21  ;;  %v357_v56 = vrot.slane %v352_v51, %v2944_v21  ;;  %v361_v57 = vrot.slane %v352_v51, %v2938_v20  ;;  %s3736_s18 = smov 111  }
  0x71   : > { %903 = vmatprep.mubr.f32.mxu0 %v717_v17  ;;  %vm396_vm2 = vcmp.lt.s32.totalorder %v2936_v19, 15  ;;  %vm450_vm3 = vcmp.lt.s32.totalorder %v2936_v19, 1  ;;  %vm512_vm4 = vcmp.lt.s32.totalorder %v2936_v19, 127  ;;  %vm566_vm5 = vcmp.lt.s32.totalorder %v2936_v19, 113 }
  0x72   : > { %vm620_vm6 = vcmp.lt.s32.totalorder %v2936_v19, 112  ;;  %vm674_vm7 = vcmp.lt.s32.totalorder %v2936_v19, 111  ;;  %v2069_v19 = vld [vmem:[%s2925_s10 + $0x88] sm:$0xff] }
  0x73   : > { %277 = vrot.lane.b32.xlu1 %v2814_v12, %s2566_s25  ;;  %275 = vrot.lane.b32.xlu0 %v2817_v13, %s2566_s25 }
  0x77   : > { %285 = vrot.lane.b32.xlu1 %v2824_v14, %s2566_s25  ;;  %283 = vrot.lane.b32.xlu0 %v2827_v15, %s2566_s25 }
  0x7b   : > { %328 = vrot.lane.b32.xlu1 %v2807_v11, %s2567_s27  ;;  %326 = vrot.lane.b32.xlu0 %v2797_v9, %s2567_s27 }
  0x7f   : > { %336 = vrot.lane.b32.xlu1 %v2804_v10, %s2567_s27  ;;  %334 = vrot.lane.b32.xlu0 %v2794_v8, %s2567_s27 }
  0x83   : > { %332 = vrot.lane.b32.xlu1 %v2814_v12, %s2567_s27  ;;  %330 = vrot.lane.b32.xlu0 %v2817_v13, %s2567_s27 }
  0x87   : > { %340 = vrot.lane.b32.xlu1 %v2824_v14, %s2567_s27  ;;  %338 = vrot.lane.b32.xlu0 %v2827_v15, %s2567_s27 }
  0x8b   : > { %382 = vrot.lane.b32.xlu1 %v2807_v11, %s2568_s29  ;;  %380 = vrot.lane.b32.xlu0 %v2797_v9, %s2568_s29 }
  0x8f   : > { %390 = vrot.lane.b32.xlu1 %v2804_v10, %s2568_s29  ;;  %388 = vrot.lane.b32.xlu0 %v2794_v8, %s2568_s29 }
  0x93   : > { %386 = vrot.lane.b32.xlu1 %v2814_v12, %s2568_s29  ;;  %384 = vrot.lane.b32.xlu0 %v2817_v13, %s2568_s29 }
  0x97   : > { %394 = vrot.lane.b32.xlu1 %v2824_v14, %s2568_s29  ;;  %392 = vrot.lane.b32.xlu0 %v2827_v15, %s2568_s29 }
  0x9b   : > { %436 = vrot.lane.b32.xlu1 %v2807_v11, %s2569_s23  ;;  %434 = vrot.lane.b32.xlu0 %v2797_v9, %s2569_s23 }
  0x9f   : > { %444 = vrot.lane.b32.xlu1 %v2804_v10, %s2569_s23  ;;  %442 = vrot.lane.b32.xlu0 %v2794_v8, %s2569_s23 }
  0xa3   : > { %440 = vrot.lane.b32.xlu1 %v2814_v12, %s2569_s23  ;;  %438 = vrot.lane.b32.xlu0 %v2817_v13, %s2569_s23 }
  0xa7   : > { %448 = vrot.lane.b32.xlu1 %v2824_v14, %s2569_s23  ;;  %446 = vrot.lane.b32.xlu0 %v2827_v15, %s2569_s23 }
  0xab   : > { %498 = vrot.lane.b32.xlu1 %v2807_v11, %s2570_s26  ;;  %496 = vrot.lane.b32.xlu0 %v2797_v9, %s2570_s26 }
  0xaf   : > { %506 = vrot.lane.b32.xlu1 %v2804_v10, %s2570_s26  ;;  %504 = vrot.lane.b32.xlu0 %v2794_v8, %s2570_s26 }
  0xb3   : > { %502 = vrot.lane.b32.xlu1 %v2814_v12, %s2570_s26  ;;  %500 = vrot.lane.b32.xlu0 %v2817_v13, %s2570_s26 }
  0xb7   : > { %510 = vrot.lane.b32.xlu1 %v2824_v14, %s2570_s26  ;;  %508 = vrot.lane.b32.xlu0 %v2827_v15, %s2570_s26 }
  0xbb   : > { %552 = vrot.lane.b32.xlu1 %v2807_v11, %s2571_s12  ;;  %550 = vrot.lane.b32.xlu0 %v2797_v9, %s2571_s12 }
  0xbf   : > { %560 = vrot.lane.b32.xlu1 %v2804_v10, %s2571_s12  ;;  %558 = vrot.lane.b32.xlu0 %v2794_v8, %s2571_s12 }
  0xc3   : > { %556 = vrot.lane.b32.xlu1 %v2814_v12, %s2571_s12  ;;  %554 = vrot.lane.b32.xlu0 %v2817_v13, %s2571_s12 }
  0xc7   : > { %564 = vrot.lane.b32.xlu1 %v2824_v14, %s2571_s12  ;;  %562 = vrot.lane.b32.xlu0 %v2827_v15, %s2571_s12 }
  0xcb   : > { %606 = vrot.lane.b32.xlu1 %v2807_v11, %s2572_s30  ;;  %604 = vrot.lane.b32.xlu0 %v2797_v9, %s2572_s30 }
  0xcf   : > { %614 = vrot.lane.b32.xlu1 %v2804_v10, %s2572_s30  ;;  %612 = vrot.lane.b32.xlu0 %v2794_v8, %s2572_s30 }
  0xd3   : > { %610 = vrot.lane.b32.xlu1 %v2814_v12, %s2572_s30  ;;  %608 = vrot.lane.b32.xlu0 %v2817_v13, %s2572_s30 }
  0xd7   : > { %618 = vrot.lane.b32.xlu1 %v2824_v14, %s2572_s30  ;;  %616 = vrot.lane.b32.xlu0 %v2827_v15, %s2572_s30 }
  0xdb   : > { %660 = vrot.lane.b32.xlu1 %v2807_v11, %s3718_s11  ;;  %658 = vrot.lane.b32.xlu0 %v2797_v9, %s3718_s11 }
  0xdd   : > { %v280_v23 = vpop.permute.xlu1 %279  ;;  %v272_v24 = vpop.permute.xlu0 %271 }
  0xde   : > { %v290_v26 = vsel %vm289_vm0, %v272_v24, %v280_v23  ;;  %v294_v28 = vsel %vm289_vm0, %v280_v23, %v272_v24 }
  0xdf   : > { %668 = vrot.lane.b32.xlu1 %v2804_v10, %s3718_s11  ;;  %666 = vrot.lane.b32.xlu0 %v2794_v8, %s3718_s11  ;;  %v311_v33 = vmul.f32 %v307_v25, %v290_v26  ;;  %v310_v35 = vmul.f32 %v303_v27, %v294_v28 }
  0xe1   : > { %v282_v29 = vpop.permute.xlu1 %281  ;;  %v274_v30 = vpop.permute.xlu0 %273 }
  0xe2   : > { %v295_v31 = vsel %vm289_vm0, %v282_v29, %v274_v30  ;;  %v291_v32 = vsel %vm289_vm0, %v274_v30, %v282_v29 }
  0xe3   : > { %664 = vrot.lane.b32.xlu1 %v2814_v12, %s3718_s11  ;;  %662 = vrot.lane.b32.xlu0 %v2817_v13, %s3718_s11  ;;  %v313_v34 = vmul.f32 %v307_v25, %v291_v32  ;;  %v312_v36 = vmul.f32 %v303_v27, %v295_v31 }
  0xe5   : > { %v278_v37 = vpop.permute.xlu1 %277  ;;  %v276_v38 = vpop.permute.xlu0 %275  ;;  %v2096_v39 = vpack.c.bf16 %v313_v34, %v311_v33  ;;  %v2098_v40 = vpack.c.bf16 %v312_v36, %v310_v35  ;;  %v406_v34 = vld [vmem:[#allocation6 + $0x2] ss:$8 sm:$0x3] }
  0xe7   : > { %672 = vrot.lane.b32.xlu1 %v2824_v14, %s3718_s11  ;;  %670 = vrot.lane.b32.xlu0 %v2827_v15, %s3718_s11  ;;  %s2984_s11 = scalar_lea.vmem %s3709_s2, %s2093_s13 }
  0xe8   : > { %2097 = vmatprep.subr.bf16.mxu0 %v2096_v39  ;;  %v802_v61 = vld [vmem:[%s2984_s11] sm:$0xff]  ;;  %v803_v62 = vld [vmem:[%s2984_s11 + $0x8] sm:$0xff]  ;;  %v805_v7 = vld [vmem:[%s2984_s11 + $0x18] sm:$0xff]  ;;  %v411_v39 = vrot.slane %v406_v34, %v2944_v21 }
  0xe9   : > { %2099 = vmatpush1.bf16.msra.mxu0 %v2098_v40  ;;  %v286_v41 = vpop.permute.xlu1 %285  ;;  %v284_v42 = vpop.permute.xlu0 %283  ;;  %v804_v16 = vld [vmem:[%s2984_s11 + $0x10] sm:$0xff]  ;;  %v415_v40 = vrot.slane %v406_v34, %v2938_v20 }
  0xea   : > { %v293_v43 = vsel %vm289_vm0, %v278_v37, %v286_v41  ;;  %v297_v44 = vsel %vm289_vm0, %v286_v41, %v278_v37  ;;  %v292_v45 = vsel %vm289_vm0, %v276_v38, %v284_v42  ;;  %v296_v46 = vsel %vm289_vm0, %v284_v42, %v276_v38 }
  0xeb   : > { %v316_v47 = vmul.f32 %v303_v27, %v297_v44  ;;  %v317_v48 = vmul.f32 %v307_v25, %v293_v43  ;;  %v314_v49 = vmul.f32 %v303_v27, %v296_v46  ;;  %v315_v50 = vmul.f32 %v307_v25, %v292_v45  ;;  %808 = vperm.xlu0 %2374, %v802_v61  }
  0xec   : > { %813 = vperm.xlu1 %2375, %v803_v62  }
  0xed   : > { %v329_v52 = vpop.permute.xlu1 %328  ;;  %v327_v53 = vpop.permute.xlu0 %326  ;;  %v2100_v54 = vpack.c.bf16 %v317_v48, %v315_v50  ;;  %v2102_v55 = vpack.c.bf16 %v316_v47, %v314_v49 }
  0xef   : > { %2101 = vmatprep.subr.bf16.mxu0 %v2100_v54  ;;  %823 = vperm.xlu0 %2374, %v805_v7  }
  0xf0   : > { %2103 = vmatpush1.bf16.msra.mxu0 %v2102_v55  ;;  %818 = vperm.xlu1 %2375, %v804_v16  }
  0xf1   : > { %v337_v59 = vpop.permute.xlu1 %336  ;;  %v335_v60 = vpop.permute.xlu0 %334 }
  0xf2   : > { %v344_v63 = vsel %vm342_vm1, %v329_v52, %v337_v59  ;;  %v348_v0 = vsel %vm342_vm1, %v337_v59, %v329_v52  ;;  %v343_v1 = vsel %vm342_vm1, %v327_v53, %v335_v60  ;;  %v347_v2 = vsel %vm342_vm1, %v335_v60, %v327_v53 }
  0xf3   : > { %v366_v3 = vmul.f32 %v357_v56, %v348_v0  ;;  %v367_v4 = vmul.f32 %v361_v57, %v344_v63  ;;  %v364_v5 = vmul.f32 %v357_v56, %v347_v2  ;;  %v365_v6 = vmul.f32 %v361_v57, %v343_v1  ;;  %v460_v1 = vld [vmem:[#allocation6 + $0x3] ss:$8 sm:$0x3] }
  0xf4   : > { %v469_v7 = vrot.slane %v460_v1, %v2938_v20 }
  0xf5   : > { %v333_v17 = vpop.permute.xlu1 %332  ;;  %v331_v18 = vpop.permute.xlu0 %330  ;;  %v2104_v22 = vpack.c.bf16 %v367_v4, %v365_v6  ;;  %v2106_v23 = vpack.c.bf16 %v366_v3, %v364_v5  ;;  %v465_v6 = vrot.slane %v460_v1, %v2944_v21 }
  0xf7   : > { %2105 = vmatprep.subr.bf16.mxu0 %v2104_v22 }
  0xf8   : > { %2107 = vmatpush1.bf16.msra.mxu0 %v2106_v23 }
  0xf9   : > { %v341_v24 = vpop.permute.xlu1 %340  ;;  %v339_v25 = vpop.permute.xlu0 %338 }
  0xfa   : > { %v346_v26 = vsel %vm342_vm1, %v333_v17, %v341_v24  ;;  %v350_v27 = vsel %vm342_vm1, %v341_v24, %v333_v17  ;;  %v345_v28 = vsel %vm342_vm1, %v331_v18, %v339_v25  ;;  %v349_v29 = vsel %vm342_vm1, %v339_v25, %v331_v18 }
  0xfb   : > { %v370_v30 = vmul.f32 %v357_v56, %v350_v27  ;;  %v371_v31 = vmul.f32 %v361_v57, %v346_v26  ;;  %v368_v32 = vmul.f32 %v357_v56, %v349_v29  ;;  %v369_v33 = vmul.f32 %v361_v57, %v345_v28 }
  0xfd   : > { %v383_v35 = vpop.permute.xlu1 %382  ;;  %v381_v36 = vpop.permute.xlu0 %380  ;;  %v2108_v37 = vpack.c.bf16 %v371_v31, %v369_v33  ;;  %v2110_v38 = vpack.c.bf16 %v370_v30, %v368_v32 }
  0xff   : > { %2109 = vmatprep.subr.bf16.mxu0 %v2108_v37 }
 0x100   : > { %2111 = vmatpush1.bf16.msra.mxu0 %v2110_v38 }
 0x101   : > { %v391_v41 = vpop.permute.xlu1 %390  ;;  %v389_v42 = vpop.permute.xlu0 %388 }
 0x102   : > { %v398_v43 = vsel %vm396_vm2, %v383_v35, %v391_v41  ;;  %v402_v44 = vsel %vm396_vm2, %v391_v41, %v383_v35  ;;  %v397_v45 = vsel %vm396_vm2, %v381_v36, %v389_v42  ;;  %v401_v46 = vsel %vm396_vm2, %v389_v42, %v381_v36 }
 0x103   : > { %v420_v47 = vmul.f32 %v411_v39, %v402_v44  ;;  %v421_v48 = vmul.f32 %v415_v40, %v398_v43  ;;  %v418_v49 = vmul.f32 %v411_v39, %v401_v46  ;;  %v419_v50 = vmul.f32 %v415_v40, %v397_v45  ;;  %v522_v43 = vld [vmem:[#allocation6 + $0x5] ss:$8 sm:$0x3] }
 0x105   : > { %v387_v51 = vpop.permute.xlu1 %386  ;;  %v385_v52 = vpop.permute.xlu0 %384  ;;  %v2112_v53 = vpack.c.bf16 %v421_v48, %v419_v50  ;;  %v2114_v54 = vpack.c.bf16 %v420_v47, %v418_v49  ;;  %v2128_v48 = vpack.c.bf16 %v2804_v10, %v2794_v8  ;;  %v531_v49 = vrot.slane %v522_v43, %v2938_v20 }
 0x106   : > { %v2130_v50 = vpack.c.bf16 %v2807_v11, %v2797_v9 }
 0x107   : > { %2113 = vmatprep.subr.bf16.mxu0 %v2112_v53 }
 0x108   : > { %2115 = vmatpush1.bf16.msra.mxu0 %v2114_v54  ;;  %v2132_v54 = vpack.c.bf16 %v2824_v14, %v2827_v15 }
 0x109   : > { %v395_v55 = vpop.permute.xlu1 %394  ;;  %v393_v56 = vpop.permute.xlu0 %392 }
 0x10a   : > { %v400_v57 = vsel %vm396_vm2, %v387_v51, %v395_v55  ;;  %v404_v58 = vsel %vm396_vm2, %v395_v55, %v387_v51  ;;  %v399_v59 = vsel %vm396_vm2, %v385_v52, %v393_v56  ;;  %v403_v60 = vsel %vm396_vm2, %v393_v56, %v385_v52 }
 0x10b   : > { %v424_v61 = vmul.f32 %v411_v39, %v404_v58  ;;  %v425_v62 = vmul.f32 %v415_v40, %v400_v57  ;;  %v422_v63 = vmul.f32 %v411_v39, %v403_v60  ;;  %v423_v0 = vmul.f32 %v415_v40, %v399_v59 }
 0x10c   : > { %v527_v51 = vrot.slane %v522_v43, %v2944_v21  ;;  %v2134_v57 = vpack.c.bf16 %v2814_v12, %v2817_v13 }
 0x10d   : > { %v437_v2 = vpop.permute.xlu1 %436  ;;  %v435_v3 = vpop.permute.xlu0 %434  ;;  %v2116_v4 = vpack.c.bf16 %v425_v62, %v423_v0  ;;  %v2118_v5 = vpack.c.bf16 %v424_v61, %v422_v63 }
 0x10f   : > { %2117 = vmatprep.subr.bf16.mxu0 %v2116_v4 }
 0x110   : > { %2119 = vmatpush1.bf16.msra.mxu0 %v2118_v5 }
 0x111   : > { %v445_v16 = vpop.permute.xlu1 %444  ;;  %v443_v17 = vpop.permute.xlu0 %442 }
 0x112   : > { %v452_v18 = vsel %vm450_vm3, %v437_v2, %v445_v16  ;;  %v456_v22 = vsel %vm450_vm3, %v445_v16, %v437_v2  ;;  %v451_v23 = vsel %vm450_vm3, %v435_v3, %v443_v17  ;;  %v455_v24 = vsel %vm450_vm3, %v443_v17, %v435_v3 }
 0x113   : > { %v474_v25 = vmul.f32 %v465_v6, %v456_v22  ;;  %v475_v26 = vmul.f32 %v469_v7, %v452_v18  ;;  %v472_v27 = vmul.f32 %v465_v6, %v455_v24  ;;  %v473_v28 = vmul.f32 %v469_v7, %v451_v23 }
 0x115   : > { %v441_v29 = vpop.permute.xlu1 %440  ;;  %v439_v30 = vpop.permute.xlu0 %438  ;;  %v2120_v31 = vpack.c.bf16 %v475_v26, %v473_v28  ;;  %v2122_v32 = vpack.c.bf16 %v474_v25, %v472_v27 }
 0x117   : > { %2121 = vmatprep.subr.bf16.mxu0 %v2120_v31 }
 0x118   : > { %2123 = vmatpush1.bf16.msra.mxu0 %v2122_v32 }
 0x119   : > { %v449_v33 = vpop.permute.xlu1 %448  ;;  %v447_v34 = vpop.permute.xlu0 %446 }
 0x11a   : > { %v454_v35 = vsel %vm450_vm3, %v441_v29, %v449_v33  ;;  %v458_v36 = vsel %vm450_vm3, %v449_v33, %v441_v29  ;;  %v453_v37 = vsel %vm450_vm3, %v439_v30, %v447_v34  ;;  %v457_v38 = vsel %vm450_vm3, %v447_v34, %v439_v30 }
 0x11b   : > { %v478_v39 = vmul.f32 %v465_v6, %v458_v36  ;;  %v479_v40 = vmul.f32 %v469_v7, %v454_v35  ;;  %v476_v41 = vmul.f32 %v465_v6, %v457_v38  ;;  %v477_v42 = vmul.f32 %v469_v7, %v453_v37  ;;  %v576_v6 = vld [vmem:[#allocation6 + $0x6] ss:$8 sm:$0x3] }
 0x11c   : > { %v581_v22 = vrot.slane %v576_v6, %v2944_v21  ;;  %v585_v23 = vrot.slane %v576_v6, %v2938_v20 }
 0x11d   : > { %v499_v44 = vpop.permute.xlu1 %498  ;;  %v497_v45 = vpop.permute.xlu0 %496  ;;  %v2124_v46 = vpack.c.bf16 %v479_v40, %v477_v42  ;;  %v2126_v47 = vpack.c.bf16 %v478_v39, %v476_v41 }
 0x11f   : > { %2125 = vmatprep.subr.bf16.mxu0 %v2124_v46 }
 0x120   : > { %2127 = vmatpush1.bf16.msra.mxu0 %v2126_v47 }
 0x121   : > { %v507_v52 = vpop.permute.xlu1 %506  ;;  %v505_v53 = vpop.permute.xlu0 %504  ;;  %2129 = vmatprep.subr.bf16.mxu0 %v2128_v48  ;;  %v630_v48 = vld [vmem:[#allocation6 + $0x7] ss:$8 sm:$0x3] }
 0x122   : > { %v514_v8 = vsel %vm512_vm4, %v499_v44, %v507_v52  ;;  %v518_v10 = vsel %vm512_vm4, %v507_v52, %v499_v44  ;;  %v513_v55 = vsel %vm512_vm4, %v497_v45, %v505_v53  ;;  %v517_v9 = vsel %vm512_vm4, %v505_v53, %v497_v45 }
 0x123   : > { %v537_v11 = vmul.f32 %v531_v49, %v518_v10  ;;  %v535_v56 = vmul.f32 %v531_v49, %v517_v9  ;;  %v536_v58 = vmul.f32 %v527_v51, %v514_v8  ;;  %v534_v14 = vmul.f32 %v527_v51, %v513_v55 }
 0x124   : > { %2131 = vmatpush1.bf16.msra.mxu0 %v2130_v50  ;;  %v635_v53 = vrot.slane %v630_v48, %v2944_v21 }
 0x125   : > { %v503_v15 = vpop.permute.xlu1 %502  ;;  %v501_v59 = vpop.permute.xlu0 %500  ;;  %2133 = vmatprep.subr.bf16.mxu0 %v2132_v54  ;;  %v2136_v60 = vpack.c.bf16 %v537_v11, %v535_v56  ;;  %v2138_v63 = vpack.c.bf16 %v536_v58, %v534_v14  ;;  %v639_v54 = vrot.slane %v630_v48, %v2938_v20 }
 0x128   : > { %2135 = vmatpush1.bf16.msra.mxu0 %v2134_v57 }
 0x129   : > { %v511_v61 = vpop.permute.xlu1 %510  ;;  %v509_v62 = vpop.permute.xlu0 %508  ;;  %2137 = vmatprep.subr.bf16.mxu0 %v2136_v60 }
 0x12a   : > { %v516_v0 = vsel %vm512_vm4, %v503_v15, %v511_v61  ;;  %v520_v1 = vsel %vm512_vm4, %v511_v61, %v503_v15  ;;  %v515_v12 = vsel %vm512_vm4, %v501_v59, %v509_v62  ;;  %v519_v13 = vsel %vm512_vm4, %v509_v62, %v501_v59 }
 0x12b   : > { %v540_v2 = vmul.f32 %v527_v51, %v516_v0  ;;  %v541_v3 = vmul.f32 %v531_v49, %v520_v1  ;;  %v538_v4 = vmul.f32 %v527_v51, %v515_v12  ;;  %v539_v5 = vmul.f32 %v531_v49, %v519_v13 }
 0x12c   : > { %2139 = vmatpush1.bf16.msra.mxu0 %v2138_v63 }
 0x12d   : > { %v553_v7 = vpop.permute.xlu1 %552  ;;  %v551_v16 = vpop.permute.xlu0 %550  ;;  %v2140_v17 = vpack.c.bf16 %v541_v3, %v539_v5  ;;  %v2142_v18 = vpack.c.bf16 %v540_v2, %v538_v4 }
 0x12f   : > { %2141 = vmatprep.subr.bf16.mxu0 %v2140_v17 }
 0x130   : > { %2143 = vmatpush1.bf16.msra.mxu0 %v2142_v18 }
 0x131   : > { %v561_v24 = vpop.permute.xlu1 %560  ;;  %v559_v25 = vpop.permute.xlu0 %558 }
 0x132   : > { %v568_v26 = vsel %vm566_vm5, %v553_v7, %v561_v24  ;;  %v572_v27 = vsel %vm566_vm5, %v561_v24, %v553_v7  ;;  %v567_v28 = vsel %vm566_vm5, %v551_v16, %v559_v25  ;;  %v571_v29 = vsel %vm566_vm5, %v559_v25, %v551_v16  ;;  %v684_v7 = vld [vmem:[#allocation6 + $0x10] ss:$8 sm:$0x3]  ;;  %v716_v25 = vld [vmem:[%s2925_s10] sm:$0xff] }
 0x133   : > { %v590_v30 = vmul.f32 %v581_v22, %v568_v26  ;;  %v591_v31 = vmul.f32 %v585_v23, %v572_v27  ;;  %v588_v32 = vmul.f32 %v581_v22, %v567_v28  ;;  %v589_v33 = vmul.f32 %v585_v23, %v571_v29  ;;  %v720_v28 = vld [vmem:[%s2925_s10 + $0x20] sm:$0xff] }
 0x134   : > { %v693_v24 = vrot.slane %v684_v7, %v2938_v20 }
 0x135   : > { %v557_v34 = vpop.permute.xlu1 %556  ;;  %v555_v35 = vpop.permute.xlu0 %554  ;;  %v2144_v36 = vpack.c.bf16 %v591_v31, %v589_v33  ;;  %v2146_v37 = vpack.c.bf16 %v590_v30, %v588_v32 }
 0x137   : > { %2145 = vmatprep.subr.bf16.mxu0 %v2144_v36 }
 0x138   : > { %2147 = vmatpush1.bf16.msra.mxu0 %v2146_v37  ;;  %v719_v37 = vld [vmem:[%s2925_s10 + $0x18] sm:$0xff] }
 0x139   : > { %v565_v38 = vpop.permute.xlu1 %564  ;;  %v563_v39 = vpop.permute.xlu0 %562 }
 0x13a   : > { %v570_v40 = vsel %vm566_vm5, %v557_v34, %v565_v38  ;;  %v574_v41 = vsel %vm566_vm5, %v565_v38, %v557_v34  ;;  %v569_v42 = vsel %vm566_vm5, %v555_v35, %v563_v39  ;;  %v573_v43 = vsel %vm566_vm5, %v563_v39, %v555_v35 }
 0x13b   : > { %v594_v44 = vmul.f32 %v581_v22, %v570_v40  ;;  %v595_v45 = vmul.f32 %v585_v23, %v574_v41  ;;  %v592_v46 = vmul.f32 %v581_v22, %v569_v42  ;;  %v593_v47 = vmul.f32 %v585_v23, %v573_v43  ;;  %v723_v42 = vld [vmem:[%s2925_s10 + $0x38] sm:$0xff]  ;;  %v722_v43 = vld [vmem:[%s2925_s10 + $0x30] sm:$0xff] }
 0x13c   : > { %v689_v23 = vrot.slane %v684_v7, %v2944_v21 }
 0x13d   : > { %v607_v49 = vpop.permute.xlu1 %606  ;;  %v605_v50 = vpop.permute.xlu0 %604  ;;  %v2148_v51 = vpack.c.bf16 %v595_v45, %v593_v47  ;;  %v2150_v52 = vpack.c.bf16 %v594_v44, %v592_v46  ;;  %v726_v46 = vld [vmem:[%s2925_s10 + $0x50] sm:$0xff] }
 0x13f   : > { %2149 = vmatprep.subr.bf16.mxu0 %v2148_v51 }
 0x140   : > { %2151 = vmatpush1.bf16.msra.mxu0 %v2150_v52 }
 0x141   : > { %v615_v8 = vpop.permute.xlu1 %614  ;;  %v613_v10 = vpop.permute.xlu0 %612 }
 0x142   : > { %v622_v55 = vsel %vm620_vm6, %v607_v49, %v615_v8  ;;  %v626_v9 = vsel %vm620_vm6, %v615_v8, %v607_v49  ;;  %v621_v11 = vsel %vm620_vm6, %v605_v50, %v613_v10  ;;  %v625_v56 = vsel %vm620_vm6, %v613_v10, %v605_v50  ;;  %v725_v8 = vld [vmem:[%s2925_s10 + $0x48] sm:$0xff] }
 0x143   : > { %v644_v57 = vmul.f32 %v635_v53, %v622_v55  ;;  %v645_v58 = vmul.f32 %v639_v54, %v626_v9  ;;  %v642_v14 = vmul.f32 %v635_v53, %v621_v11  ;;  %v643_v15 = vmul.f32 %v639_v54, %v625_v56  ;;  %v718_v11 = vld [vmem:[%s2925_s10 + $0x10] sm:$0xff]  ;;  %v721_v56 = vld [vmem:[%s2925_s10 + $0x28] sm:$0xff] }
 0x144   : > { %v2575_v9 = vmov 0.0  }
 0x145   : > { %v611_v59 = vpop.permute.xlu1 %610  ;;  %v609_v60 = vpop.permute.xlu0 %608  ;;  %v2152_v61 = vpack.c.bf16 %v645_v58, %v643_v15  ;;  %v2154_v62 = vpack.c.bf16 %v644_v57, %v642_v14  ;;  %v724_v57 = vld [vmem:[%s2925_s10 + $0x40] sm:$0xff]  ;;  %v727_v58 = vld [vmem:[%s2925_s10 + $0x58] sm:$0xff] }
 0x147   : > { %2153 = vmatprep.subr.bf16.mxu0 %v2152_v61 }
 0x148   : > { %2155 = vmatpush1.bf16.msra.mxu0 %v2154_v62 }
 0x149   : > { %v619_v63 = vpop.permute.xlu1 %618  ;;  %v617_v0 = vpop.permute.xlu0 %616 }
 0x14a   : > { %v624_v1 = vsel %vm620_vm6, %v611_v59, %v619_v63  ;;  %v628_v12 = vsel %vm620_vm6, %v619_v63, %v611_v59  ;;  %v623_v13 = vsel %vm620_vm6, %v609_v60, %v617_v0  ;;  %v627_v2 = vsel %vm620_vm6, %v617_v0, %v609_v60 }
 0x14b   : > { %v648_v3 = vmul.f32 %v635_v53, %v624_v1  ;;  %v649_v4 = vmul.f32 %v639_v54, %v628_v12  ;;  %v646_v5 = vmul.f32 %v635_v53, %v623_v13  ;;  %v647_v6 = vmul.f32 %v639_v54, %v627_v2 }
 0x14d   : > { %v661_v16 = vpop.permute.xlu1 %660  ;;  %v659_v17 = vpop.permute.xlu0 %658  ;;  %v2156_v18 = vpack.c.bf16 %v649_v4, %v647_v6  ;;  %v2158_v22 = vpack.c.bf16 %v648_v3, %v646_v5 }
 0x14f   : > { %2157 = vmatprep.subr.bf16.mxu0 %v2156_v18 }
 0x150   : > { %2159 = vmatpush1.bf16.msra.mxu0 %v2158_v22 }
 0x151   : > { %v669_v26 = vpop.permute.xlu1 %668  ;;  %v667_v27 = vpop.permute.xlu0 %666 }
 0x152   : > { %v676_v29 = vsel %vm674_vm7, %v661_v16, %v669_v26  ;;  %v680_v30 = vsel %vm674_vm7, %v669_v26, %v661_v16  ;;  %v675_v31 = vsel %vm674_vm7, %v659_v17, %v667_v27  ;;  %v679_v32 = vsel %vm674_vm7, %v667_v27, %v659_v17 }
 0x153   : > { %v698_v33 = vmul.f32 %v689_v23, %v676_v29  ;;  %v699_v34 = vmul.f32 %v693_v24, %v680_v30  ;;  %v696_v35 = vmul.f32 %v689_v23, %v675_v31  ;;  %v697_v36 = vmul.f32 %v693_v24, %v679_v32  ;;  %904 = vmatmul.mubr.f32.vlgmr.msra.gmra.mrb[0].mxu0 %v716_v25 }
 0x154   : > { %909 = vmatprep.mubr.f32.mxu0 %v720_v28 }
 0x155   : > { %v2162_v38 = vpack.c.bf16 %v698_v33, %v696_v35  ;;  %v665_v39 = vpop.permute.xlu1 %664  ;;  %v663_v40 = vpop.permute.xlu0 %662  ;;  %v2160_v41 = vpack.c.bf16 %v699_v34, %v697_v36 }
 0x157   : > { %910 = vmatmul.mubr.f32.gmra.mrb[2].mxu0 %v719_v37  ;;  %2161 = vmatprep.subr.bf16.mxu0 %v2160_v41 }
 0x158   : > { %2163 = vmatpush1.bf16.msra.mxu0 %v2162_v38  ;;  %915 = vmatprep.mubr.f32.mxu0 %v723_v42 }
 0x159   : > { %v673_v44 = vpop.permute.xlu1 %672  ;;  %v671_v45 = vpop.permute.xlu0 %670 }
 0x15a   : > { %v678_v47 = vsel %vm674_vm7, %v665_v39, %v673_v44  ;;  %v682_v48 = vsel %vm674_vm7, %v673_v44, %v665_v39  ;;  %v677_v49 = vsel %vm674_vm7, %v663_v40, %v671_v45  ;;  %v681_v50 = vsel %vm674_vm7, %v671_v45, %v663_v40 }
 0x15b   : > { %v702_v51 = vmul.f32 %v689_v23, %v678_v47  ;;  %v703_v52 = vmul.f32 %v693_v24, %v682_v48  ;;  %v700_v53 = vmul.f32 %v689_v23, %v677_v49  ;;  %v701_v54 = vmul.f32 %v693_v24, %v681_v50  ;;  %916 = vmatmul.mubr.f32.gmra.mrb[4].mxu0 %v722_v43 }
 0x15c   : > { %921 = vmatprep.mubr.f32.mxu0 %v726_v46 }
 0x15d   : > { %v2166_v10 = vpack.c.bf16 %v702_v51, %v700_v53  ;;  %v2164_v55 = vpack.c.bf16 %v703_v52, %v701_v54 }
 0x15f   : > { %922 = vmatmul.mubr.f32.gmra.mrb[6].mxu0 %v725_v8  ;;  %2165 = vmatprep.subr.bf16.mxu0 %v2164_v55 }
 0x160   : > { %2167 = vmatpush1.bf16.msra.mxu0 %v2166_v10  ;;  %992 = vmatprep.mubr.f32.mxu0 %v2575_v9 }
 0x163   : > { %2058 = vmatmul.mubr.msk.f32.vlgmr.msra.gmra.mrb[0].mxu0 %vm826_vm8, %v718_v11 }
 0x164   : > { %998 = vmatprep.mubr.f32.mxu0 %v2575_v9 }
 0x167   : > { %2059 = vmatmul.mubr.msk.f32.gmra.mrb[2].mxu0 %vm826_vm8, %v721_v56 }
 0x168   : > { %1004 = vmatprep.mubr.f32.mxu0 %v2575_v9 }
 0x16a   : > { %v809_v14 = vpop.permute.xlu0 %808 }
 0x16b   : > { %2060 = vmatmul.mubr.msk.f32.gmra.mrb[4].mxu0 %vm826_vm8, %v724_v57  ;;  %v814_v61 = vpop.permute.xlu1 %813 }
 0x16c   : > { %1010 = vmatprep.mubr.f32.mxu0 %v2575_v9 }
 0x16e   : > { %v824_v25 = vpop.permute.xlu0 %823 }
 0x16f   : > { %2061 = vmatmul.mubr.msk.f32.gmra.mrb[6].mxu0 %vm826_vm8, %v727_v58  ;;  %v819_v5 = vpop.permute.xlu1 %818 }
 0x236   : > { %v994_v15 = vpop.f32.mrb[0].mxu0 }
 0x237   : > { %v2240_v59 = vadd.f32 %v994_v15, %v809_v14  ;;  %v996_v60 = vpop.f32.mrb[1].mxu0 }
 0x238   : > { %v2241_v62 = vadd.f32 %v996_v60, %v809_v14 }
 0x239   : > { %v1033_v63 = vmul.f32 %v2240_v59, %v2240_v59 }
 0x23a   : > { %v1000_v0 = vpop.f32.mrb[2].mxu0  ;;  %v1017_v1 = vadd.f32 %v2241_v62, %v2240_v59  ;;  %v1034_v12 = vmul.f32 %v2241_v62, %v2241_v62 }
 0x23b   : > { %v3147_v13 = vadd.f32 %v1000_v0, %v814_v61  ;;  %v1002_v2 = vpop.f32.mrb[3].mxu0 }
 0x23c   : > { %v2243_v3 = vadd.f32 %v1002_v2, %v814_v61  ;;  %1018 = vadd.xlane.f32.xlu1 %v1017_v1  ;;  %v1041_v4 = vadd.f32 %v1034_v12, %v1033_v63 }
 0x23d   : > { %v1035_v6 = vmul.f32 %v3147_v13, %v3147_v13 }
 0x23e   : > { %v1006_v7 = vpop.f32.mrb[4].mxu0  ;;  %1042 = vadd.xlane.f32.xlu0 %v1041_v4  ;;  %v1036_v16 = vmul.f32 %v2243_v3, %v2243_v3  ;;  %v1020_v23 = vadd.f32 %v2243_v3, %v3147_v13 }
 0x23f   : > { %v1008_v17 = vpop.f32.mrb[5].mxu0  ;;  %v3151_v18 = vadd.f32 %v1006_v7, %v819_v5 }
 0x240   : > { %v3153_v22 = vadd.f32 %v1008_v17, %v819_v5  ;;  %v1044_v24 = vadd.f32 %v1036_v16, %v1035_v6 }
 0x241   : > { %v1037_v31 = vmul.f32 %v3151_v18, %v3151_v18 }
 0x242   : > { %v1012_v26 = vpop.f32.mrb[6].mxu0  ;;  %1021 = vadd.xlane.f32.xlu0 %v1020_v23  ;;  %1045 = vadd.xlane.f32.xlu1 %v1044_v24  ;;  %v1023_v30 = vadd.f32 %v3153_v22, %v3151_v18  ;;  %v1038_v32 = vmul.f32 %v3153_v22, %v3153_v22 }
 0x243   : > { %v3156_v27 = vadd.f32 %v1012_v26, %v824_v25  ;;  %v1014_v28 = vpop.f32.mrb[7].mxu0 }
 0x244   : > { %v3158_v29 = vadd.f32 %v1014_v28, %v824_v25  ;;  %v1047_v36 = vadd.f32 %v1038_v32, %v1037_v31 }
 0x245   : > { %v1039_v34 = vmul.f32 %v3156_v27, %v3156_v27 }
 0x246   : > { %1024 = vadd.xlane.f32.xlu0 %v1023_v30  ;;  %v1026_v33 = vadd.f32 %v3158_v29, %v3156_v27  ;;  %v1040_v35 = vmul.f32 %v3158_v29, %v3158_v29 }
 0x248   : > { %1027 = vadd.xlane.f32.xlu1 %v1026_v33  ;;  %v1050_v37 = vadd.f32 %v1040_v35, %v1039_v34 }
 0x24a   : > { %1048 = vadd.xlane.f32.xlu0 %v1047_v36 }
 0x24c   : > { %1051 = vadd.xlane.f32.xlu1 %v1050_v37 }
 0x2c9   : > { %v1019_v38 = vpop.xlane.xlu1 %1018 }
 0x2ca   : > { %v1029_v39 = vmul.f32 0.00390625, %v1019_v38 }
 0x2cb   : > { %v1043_v40 = vpop.xlane.xlu0 %1042 }
 0x2cc   : > { %v1053_v41 = vmul.f32 0.00390625, %v1043_v40  ;;  %v1057_v42 = vmul.f32 %v1029_v39, %v1029_v39  ;;  %v1065_v52 = vsub.f32 %v2240_v59, %v1029_v39  ;;  %v1066_v53 = vsub.f32 %v2241_v62, %v1029_v39 }
 0x2ce   : > { %v1061_v43 = vsub.f32 %v1053_v41, %v1057_v42  ;;  %v2078_v41 = vld [vmem:[%s2984_s11 + $0x20] sm:$0xff] }
 0x2cf   : > { %v1022_v44 = vpop.xlane.xlu0 %1021  ;;  %v1046_v45 = vpop.xlane.xlu1 %1045 }
 0x2d0   : > { %v1073_v46 = vadd.f32 1e-05, %v1061_v43  ;;  %v1030_v47 = vmul.f32 0.00390625, %v1022_v44  ;;  %v1054_v49 = vmul.f32 0.00390625, %v1046_v45  ;;  %v2079_v43 = vld [vmem:[%s2984_s11 + $0x28] sm:$0xff]  ;;  %v2080_v45 = vld [vmem:[%s2984_s11 + $0x30] sm:$0xff] }
 0x2d2   : > { %2376 = vrsqrt.f32 %v1073_v46  ;;  %v1058_v48 = vmul.f32 %v1030_v47, %v1030_v47  ;;  %v1068_v56 = vsub.f32 %v2243_v3, %v1030_v47  ;;  %v1067_v58 = vsub.f32 %v3147_v13, %v1030_v47  ;;  %v2081_v47 = vld [vmem:[%s2984_s11 + $0x38] sm:$0xff] }
 0x2d3   : > { %v1025_v61 = vpop.xlane.xlu0 %1024 }
 0x2d4   : > { %v1062_v50 = vsub.f32 %v1054_v49, %v1058_v48  ;;  %v1031_v0 = vmul.f32 0.00390625, %v1025_v61 }
 0x2d5   : > { %v1028_v62 = vpop.xlane.xlu1 %1027 }
 0x2d6   : > { %v1074_v51 = vadd.f32 1e-05, %v1062_v50  ;;  %v1032_v12 = vmul.f32 0.00390625, %v1028_v62  ;;  %v1059_v2 = vmul.f32 %v1031_v0, %v1031_v0  ;;  %v1069_v23 = vsub.f32 %v3151_v18, %v1031_v0 }
 0x2d7   : > { %v1049_v63 = vpop.xlane.xlu0 %1048  ;;  %v1070_v28 = vsub.f32 %v3153_v22, %v1031_v0 }
 0x2d8   : > { %2378 = vrsqrt.f32 %v1074_v51  ;;  %v1055_v13 = vmul.f32 0.00390625, %v1049_v63  ;;  %v1060_v5 = vmul.f32 %v1032_v12, %v1032_v12  ;;  %v1071_v25 = vsub.f32 %v3156_v27, %v1032_v12 }
 0x2d9   : > { %v1052_v1 = vpop.xlane.xlu1 %1051  ;;  %v1072_v31 = vsub.f32 %v3158_v29, %v1032_v12  ;;  %v2065_v29 = vld [vmem:[%s2925_s10 + $0x68] sm:$0xff] }
 0x2da   : > { %v1056_v3 = vmul.f32 0.00390625, %v1052_v1  ;;  %v1063_v4 = vsub.f32 %v1055_v13, %v1059_v2  ;;  %1711 = vmatprep.mubr.f32.mxu1 %v2065_v29 }
 0x2dc   : > { %v2377_v54 = vpop.eup %2376  ;;  %v1064_v6 = vsub.f32 %v1056_v3, %v1060_v5  ;;  %v1075_v7 = vadd.f32 1e-05, %v1063_v4 }
 0x2dd   : > { %v1081_v8 = vmul.f32 %v2377_v54, %v1065_v52  ;;  %v1082_v10 = vmul.f32 %v2377_v54, %v1066_v53 }
 0x2de   : > { %v1076_v16 = vadd.f32 1e-05, %v1064_v6  ;;  %2380 = vrsqrt.f32 %v1075_v7 }
 0x2df   : > { %v3172_v55 = vmax.f32 %v1081_v8, 0.0  ;;  %v3174_v11 = vmax.f32 %v1082_v10, 0.0 }
 0x2e0   : > { %2382 = vrsqrt.f32 %v1076_v16 }
 0x2e1   : > { %1105 = vrot.lane.b32.xlu1 %v3174_v11, %s2566_s25  ;;  %1097 = vrot.lane.b32.xlu0 %v3172_v55, %s2566_s25 }
 0x2e2   : > { %v2379_v57 = vpop.eup %2378 }
 0x2e3   : > { %v1084_v14 = vmul.f32 %v2379_v57, %v1068_v56  ;;  %v1083_v15 = vmul.f32 %v2379_v57, %v1067_v58  ;;  %v1121_v58 = vld [vmem:[#allocation6] ss:$8 sm:$0x3] }
 0x2e4   : > { %v1130_v62 = vrot.slane %v1121_v58, %v2938_v20 }
 0x2e5   : > { %v3181_v59 = vmax.f32 %v1084_v14, 0.0  ;;  %1149 = vrot.lane.b32.xlu1 %v3172_v55, %s2567_s27  ;;  %v3187_v60 = vmax.f32 %v1083_v15, 0.0  ;;  %v1126_v15 = vrot.slane %v1121_v58, %v2944_v21 }
 0x2e7   : > { %1107 = vrot.lane.b32.xlu0 %v3181_v59, %s2566_s25 }
 0x2e8   : > { %v2381_v17 = vpop.eup %2380 }
 0x2e9   : > { %1157 = vrot.lane.b32.xlu1 %v3174_v11, %s2567_s27  ;;  %v1085_v26 = vmul.f32 %v2381_v17, %v1069_v23  ;;  %v1086_v32 = vmul.f32 %v2381_v17, %v1070_v28  ;;  %v1173_v23 = vld [vmem:[#allocation6 + $0x1] ss:$8 sm:$0x3] }
 0x2ea   : > { %v2383_v24 = vpop.eup %2382  ;;  %v1182_v28 = vrot.slane %v1173_v23, %v2938_v20 }
 0x2eb   : > { %1151 = vrot.lane.b32.xlu0 %v3187_v60, %s2567_s27  ;;  %v1087_v30 = vmul.f32 %v2383_v24, %v1071_v25  ;;  %v3231_v18 = vmax.f32 %v1085_v26, 0.0  ;;  %v1088_v33 = vmul.f32 %v2383_v24, %v1072_v31  ;;  %v3239_v34 = vmax.f32 %v1086_v32, 0.0 }
 0x2ec   : > { %v1178_v32 = vrot.slane %v1173_v23, %v2944_v21 }
 0x2ed   : > { %1201 = vrot.lane.b32.xlu1 %v3172_v55, %s2568_s29  ;;  %v3235_v27 = vmax.f32 %v1087_v30, 0.0  ;;  %v3243_v22 = vmax.f32 %v1088_v33, 0.0 }
 0x2ef   : > { %1159 = vrot.lane.b32.xlu0 %v3181_v59, %s2567_s27 }
 0x2f1   : > { %1209 = vrot.lane.b32.xlu1 %v3174_v11, %s2568_s29 }
 0x2f3   : > { %1203 = vrot.lane.b32.xlu0 %v3187_v60, %s2568_s29 }
 0x2f5   : > { %1253 = vrot.lane.b32.xlu1 %v3172_v55, %s2569_s23 }
 0x2f7   : > { %1211 = vrot.lane.b32.xlu0 %v3181_v59, %s2568_s29 }
 0x2f9   : > { %1261 = vrot.lane.b32.xlu1 %v3174_v11, %s2569_s23 }
 0x2fb   : > { %1255 = vrot.lane.b32.xlu0 %v3187_v60, %s2569_s23 }
 0x2fd   : > { %1313 = vrot.lane.b32.xlu1 %v3172_v55, %s2570_s26 }
 0x2ff   : > { %1263 = vrot.lane.b32.xlu0 %v3181_v59, %s2569_s23 }
 0x301   : > { %1321 = vrot.lane.b32.xlu1 %v3174_v11, %s2570_s26 }
 0x303   : > { %1315 = vrot.lane.b32.xlu0 %v3187_v60, %s2570_s26 }
 0x305   : > { %1365 = vrot.lane.b32.xlu1 %v3172_v55, %s2571_s12 }
 0x307   : > { %1323 = vrot.lane.b32.xlu0 %v3181_v59, %s2570_s26 }
 0x309   : > { %1373 = vrot.lane.b32.xlu1 %v3174_v11, %s2571_s12 }
 0x30b   : > { %1367 = vrot.lane.b32.xlu0 %v3187_v60, %s2571_s12 }
 0x30d   : > { %1099 = vrot.lane.b32.xlu1 %v3187_v60, %s2566_s25 }
 0x30f   : > { %1375 = vrot.lane.b32.xlu0 %v3181_v59, %s2571_s12 }
 0x311   : > { %1101 = vrot.lane.b32.xlu1 %v3231_v18, %s2566_s25 }
 0x313   : > { %1103 = vrot.lane.b32.xlu0 %v3235_v27, %s2566_s25 }
 0x315   : > { %1109 = vrot.lane.b32.xlu1 %v3239_v34, %s2566_s25 }
 0x317   : > { %1111 = vrot.lane.b32.xlu0 %v3243_v22, %s2566_s25  ;;  %s2095_s25 = sshll.u32 %s2548_s19, 10  ;;  %s1922_s19 = scalar_lea.sflag [#allocation5], %s2770_s7 }
 0x319   : > { %1153 = vrot.lane.b32.xlu1 %v3231_v18, %s2567_s27 }
 0x31b   : > { %1155 = vrot.lane.b32.xlu0 %v3235_v27, %s2567_s27 }
 0x31d   : > { %1161 = vrot.lane.b32.xlu1 %v3239_v34, %s2567_s27 }
 0x31f   : > { %1163 = vrot.lane.b32.xlu0 %v3243_v22, %s2567_s27 }
 0x321   : > { %1205 = vrot.lane.b32.xlu1 %v3231_v18, %s2568_s29 }
 0x323   : > { %1207 = vrot.lane.b32.xlu0 %v3235_v27, %s2568_s29 }
 0x325   : > { %1213 = vrot.lane.b32.xlu1 %v3239_v34, %s2568_s29 }
 0x327   : > { %1215 = vrot.lane.b32.xlu0 %v3243_v22, %s2568_s29  ;;  %s1935_s29 = sshll.u32 %s2782_s3, 4  ;;  %s3650_s29 = int_to_ptr.vmem [resolvable:$true] %s1935_s29 }
 0x329   : > { %1257 = vrot.lane.b32.xlu1 %v3231_v18, %s2569_s23 }
 0x32b   : > { %1259 = vrot.lane.b32.xlu0 %v3235_v27, %s2569_s23 }
 0x32d   : > { %1265 = vrot.lane.b32.xlu1 %v3239_v34, %s2569_s23 }
 0x32f   : > { %1267 = vrot.lane.b32.xlu0 %v3243_v22, %s2569_s23 }
 0x331   : > { %1417 = vrot.lane.b32.xlu1 %v3172_v55, %s2572_s30 }
 0x333   : > { %1419 = vrot.lane.b32.xlu0 %v3187_v60, %s2572_s30 }
 0x335   : > { %1317 = vrot.lane.b32.xlu1 %v3231_v18, %s2570_s26 }
 0x337   : > { %1427 = vrot.lane.b32.xlu0 %v3181_v59, %s2572_s30 }
 0x339   : > { %1325 = vrot.lane.b32.xlu1 %v3239_v34, %s2570_s26 }
 0x33b   : > { %1319 = vrot.lane.b32.xlu0 %v3235_v27, %s2570_s26 }
 0x33d   : > { %1369 = vrot.lane.b32.xlu1 %v3231_v18, %s2571_s12 }
 0x33f   : > { %1327 = vrot.lane.b32.xlu0 %v3243_v22, %s2570_s26 }
 0x341   : > { %1377 = vrot.lane.b32.xlu1 %v3239_v34, %s2571_s12 }
 0x343   : > { %1371 = vrot.lane.b32.xlu0 %v3235_v27, %s2571_s12 }
 0x345   : > { %1425 = vrot.lane.b32.xlu1 %v3174_v11, %s2572_s30 }
 0x347   : > { %1379 = vrot.lane.b32.xlu0 %v3243_v22, %s2571_s12  ;;  %s3644_s12 = scalar_lea.hbm %s3711_s4, %s2095_s25 }
 0x349   : > { %1421 = vrot.lane.b32.xlu1 %v3231_v18, %s2572_s30 }
 0x34b   : > { %1423 = vrot.lane.b32.xlu0 %v3235_v27, %s2572_s30 }
 0x34d   : > { %1429 = vrot.lane.b32.xlu1 %v3239_v34, %s2572_s30 }
 0x34f   : > { %1431 = vrot.lane.b32.xlu0 %v3243_v22, %s2572_s30  ;;  %s2458_s30 = scalar_lea.vmem %s3650_s29, 1024 }
 0x350   : > { %p2459_p11 = scmp.ne.s32.totalorder %s3650_s29, %s2458_s30 }
 0x351   : > { %1469 = vrot.lane.b32.xlu1 %v3172_v55, %s3736_s18 }
 0x352   : > { %p2460_p10 = pnand %p2459_p11, %p2709_p8 }
 0x353   : > { %1471 = vrot.lane.b32.xlu0 %v3187_v60, %s3736_s18  ;;  %v1106_v35 = vpop.permute.xlu1 %1105  ;;  %v1098_v36 = vpop.permute.xlu0 %1097 }
 0x354   : > { %v1113_v63 = vsel %vm289_vm0, %v1098_v36, %v1106_v35  ;;  %v1117_v0 = vsel %vm289_vm0, %v1106_v35, %v1098_v36  ;;  %p2461_p12 = pneg %p2460_p10 }
 0x355   : > { %1477 = vrot.lane.b32.xlu1 %v3174_v11, %s3736_s18  ;;  %v1133_v2 = vmul.f32 %v1126_v15, %v1117_v0  ;;  %v1134_v5 = vmul.f32 %v1130_v62, %v1113_v63 }
 0x357   : > { %1479 = vrot.lane.b32.xlu0 %v3181_v59, %s3736_s18  ;;  %v3314_v37 = vpop.permute.xlu1 %1149 }
 0x359   : > { %v1108_v38 = vpop.permute.xlu0 %1107  ;;  %1473 = vrot.lane.b32.xlu1 %v3231_v18, %s3736_s18 }
 0x35b   : > { %1475 = vrot.lane.b32.xlu0 %v3235_v27, %s3736_s18  ;;  %v3320_v39 = vpop.permute.xlu1 %1157 }
 0x35c   : > { %v1165_v33 = vsel %vm342_vm1, %v3314_v37, %v3320_v39  ;;  %v1169_v0 = vsel %vm342_vm1, %v3320_v39, %v3314_v37 }
 0x35d   : > { %v1152_v40 = vpop.permute.xlu0 %1151  ;;  %1481 = vrot.lane.b32.xlu1 %v3239_v34, %s3736_s18 }
 0x35f   : > { %1483 = vrot.lane.b32.xlu0 %v3243_v22, %s3736_s18  ;;  %v3327_v42 = vpop.permute.xlu1 %1201 }
 0x361   : > { %v1160_v44 = vpop.permute.xlu0 %1159  ;;  %1617 = vperm.xlu1 %2375, %v2078_v41  }
 0x362   : > { %v1166_v25 = vsel %vm342_vm1, %v1152_v40, %v1160_v44  ;;  %v1170_v35 = vsel %vm342_vm1, %v1160_v44, %v1152_v40  ;;  %v1225_v40 = vld [vmem:[#allocation6 + $0x2] ss:$8 sm:$0x3] }
 0x363   : > { %1622 = vperm.xlu0 %2374, %v2079_v43   ;;  %v3331_v46 = vpop.permute.xlu1 %1209  ;;  %v1188_v36 = vmul.f32 %v1182_v28, %v1166_v25 }
 0x365   : > { %v3334_v48 = vpop.permute.xlu0 %1203  ;;  %1627 = vperm.xlu1 %2375, %v2080_v45  }
 0x367   : > { %1632 = vperm.xlu0 %2374, %v2081_v47   ;;  %v3336_v49 = vpop.permute.xlu1 %1253 }
 0x369   : > { %v3338_v50 = vpop.permute.xlu0 %1211 }
 0x36b   : > { %v3340_v51 = vpop.permute.xlu1 %1261 }
 0x36d   : > { %v3342_v52 = vpop.permute.xlu0 %1255 }
 0x36f   : > { %v3344_v53 = vpop.permute.xlu1 %1313 }
 0x371   : > { %v3346_v54 = vpop.permute.xlu0 %1263 }
 0x373   : > { %v3348_v8 = vpop.permute.xlu1 %1321 }
 0x375   : > { %v3350_v10 = vpop.permute.xlu0 %1315 }
 0x377   : > { %v3352_v56 = vpop.permute.xlu1 %1365 }
 0x379   : > { %v3354_v57 = vpop.permute.xlu0 %1323 }
 0x37b   : > { %v3356_v14 = vpop.permute.xlu1 %1373 }
 0x37d   : > { %v3359_v61 = vpop.permute.xlu0 %1367 }
 0x37f   : > { %v1100_v1 = vpop.permute.xlu1 %1099 }
 0x380   : > { %v1114_v12 = vsel %vm289_vm0, %v1100_v1, %v1108_v38  ;;  %v1118_v13 = vsel %vm289_vm0, %v1108_v38, %v1100_v1  ;;  %v1186_v1 = vmul.f32 %v1182_v28, %v1165_v33 }
 0x381   : > { %v1135_v3 = vmul.f32 %v1126_v15, %v1118_v13  ;;  %v3370_v4 = vpop.permute.xlu0 %1375  ;;  %v1136_v6 = vmul.f32 %v1130_v62, %v1114_v12  ;;  %v1187_v12 = vmul.f32 %v1178_v32, %v1170_v35 }
 0x383   : > { %v1102_v7 = vpop.permute.xlu1 %1101  ;;  %v2168_v16 = vpack.c.bf16 %v1136_v6, %v1134_v5  ;;  %v2170_v17 = vpack.c.bf16 %v1135_v3, %v1133_v2  ;;  %v1185_v3 = vmul.f32 %v1178_v32, %v1169_v0  ;;  %v1218_v5 = vsel %vm396_vm2, %v3334_v48, %v3338_v50 }
 0x384   : > { %v1234_v6 = vrot.slane %v1225_v40, %v2938_v20 }
 0x385   : > { %v1104_v24 = vpop.permute.xlu0 %1103  ;;  %2169 = vmatprep.subr.bf16.mxu1 %v2168_v16  ;;  %v1217_v16 = vsel %vm396_vm2, %v3327_v42, %v3331_v46  ;;  %v2178_v23 = vpack.c.bf16 %v1187_v12, %v1185_v3 }
 0x386   : > { %2171 = vmatpush1.bf16.msra.mxu1 %v2170_v17  ;;  %v1240_v25 = vmul.f32 %v1234_v6, %v1218_v5 }
 0x387   : > { %v1110_v26 = vpop.permute.xlu1 %1109 }
 0x388   : > { %v1115_v30 = vsel %vm289_vm0, %v1102_v7, %v1110_v26  ;;  %v1119_v31 = vsel %vm289_vm0, %v1110_v26, %v1102_v7  ;;  %v1230_v7 = vrot.slane %v1225_v40, %v2944_v21 }
 0x389   : > { %v1112_v29 = vpop.permute.xlu0 %1111  ;;  %v1137_v43 = vmul.f32 %v1126_v15, %v1119_v31  ;;  %v1138_v45 = vmul.f32 %v1130_v62, %v1115_v30 }
 0x38a   : > { %v1116_v38 = vsel %vm289_vm0, %v1104_v24, %v1112_v29  ;;  %v1120_v41 = vsel %vm289_vm0, %v1112_v29, %v1104_v24  ;;  %v1222_v24 = vsel %vm396_vm2, %v3338_v50, %v3334_v48  ;;  %v1277_v50 = vld [vmem:[#allocation6 + $0x3] ss:$8 sm:$0x3] }
 0x38b   : > { %v1139_v47 = vmul.f32 %v1126_v15, %v1120_v41  ;;  %v1140_v58 = vmul.f32 %v1130_v62, %v1116_v38  ;;  %v1154_v63 = vpop.permute.xlu1 %1153  ;;  %v2176_v62 = vpack.c.bf16 %v1188_v36, %v1186_v1  ;;  %v1221_v38 = vsel %vm396_vm2, %v3331_v46, %v3327_v42 }
 0x38c   : > { %v1238_v41 = vmul.f32 %v1234_v6, %v1217_v16  ;;  %v1239_v48 = vmul.f32 %v1230_v7, %v1222_v24  ;;  %v1286_v0 = vrot.slane %v1277_v50, %v2938_v20  ;;  %v1269_v1 = vsel %vm450_vm3, %v3336_v49, %v3340_v51 }
 0x38d   : > { %v1156_v44 = vpop.permute.xlu0 %1155  ;;  %v2172_v13 = vpack.c.bf16 %v1140_v58, %v1138_v45  ;;  %v2174_v2 = vpack.c.bf16 %v1139_v47, %v1137_v43  ;;  %v1237_v58 = vmul.f32 %v1230_v7, %v1221_v38  ;;  %v1282_v16 = vrot.slane %v1277_v50, %v2944_v21 }
 0x38f   : > { %2173 = vmatprep.subr.bf16.mxu1 %v2172_v13  ;;  %v1162_v15 = vpop.permute.xlu1 %1161  ;;  %v2186_v40 = vpack.c.bf16 %v1239_v48, %v1237_v58 }
 0x390   : > { %v1167_v37 = vsel %vm342_vm1, %v1154_v63, %v1162_v15  ;;  %v1171_v39 = vsel %vm342_vm1, %v1162_v15, %v1154_v63  ;;  %2175 = vmatpush1.bf16.msra.mxu1 %v2174_v2  ;;  %v2184_v63 = vpack.c.bf16 %v1240_v25, %v1238_v41 }
 0x391   : > { %v1164_v17 = vpop.permute.xlu0 %1163  ;;  %2177 = vmatprep.subr.bf16.mxu1 %v2176_v62  ;;  %v1189_v31 = vmul.f32 %v1178_v32, %v1171_v39  ;;  %v1190_v33 = vmul.f32 %v1182_v28, %v1167_v37 }
 0x392   : > { %v1168_v26 = vsel %vm342_vm1, %v1156_v44, %v1164_v17  ;;  %v1172_v30 = vsel %vm342_vm1, %v1164_v17, %v1156_v44  ;;  %v1274_v44 = vsel %vm450_vm3, %v3346_v54, %v3342_v52 }
 0x393   : > { %v1191_v29 = vmul.f32 %v1178_v32, %v1172_v30  ;;  %v1192_v35 = vmul.f32 %v1182_v28, %v1168_v26  ;;  %v1206_v36 = vpop.permute.xlu1 %1205  ;;  %v1270_v32 = vsel %vm450_vm3, %v3342_v52, %v3346_v54  ;;  %v1273_v52 = vsel %vm450_vm3, %v3340_v51, %v3336_v49 }
 0x394   : > { %2179 = vmatpush1.bf16.msra.mxu1 %v2178_v23  ;;  %v1292_v13 = vmul.f32 %v1286_v0, %v1270_v32  ;;  %v1290_v54 = vmul.f32 %v1286_v0, %v1269_v1  ;;  %v1291_v25 = vmul.f32 %v1282_v16, %v1274_v44  ;;  %v2200_v32 = vpack.c.bf16 %v3181_v59, %v3174_v11 }
 0x395   : > { %v1208_v43 = vpop.permute.xlu0 %1207  ;;  %v2180_v45 = vpack.c.bf16 %v1192_v35, %v1190_v33  ;;  %v2182_v47 = vpack.c.bf16 %v1191_v29, %v1189_v31  ;;  %v1289_v31 = vmul.f32 %v1282_v16, %v1273_v52  ;;  %v1330_v11 = vsel %vm512_vm4, %v3350_v10, %v3354_v57 }
 0x396   : > { %v2192_v30 = vpack.c.bf16 %v1292_v13, %v1290_v54  ;;  %v2202_v59 = vpack.c.bf16 %v3187_v60, %v3172_v55  ;;  %v1329_v44 = vsel %vm512_vm4, %v3344_v53, %v3348_v8  ;;  %v2206_v55 = vpack.c.bf16 %v3235_v27, %v3231_v18 }
 0x397   : > { %2181 = vmatprep.subr.bf16.mxu1 %v2180_v45  ;;  %v1214_v28 = vpop.permute.xlu1 %1213  ;;  %v2194_v29 = vpack.c.bf16 %v1291_v25, %v1289_v31  ;;  %v1385_v18 = vsel %vm566_vm5, %v3356_v14, %v3352_v56 }
 0x398   : > { %v1219_v42 = vsel %vm396_vm2, %v1206_v36, %v1214_v28  ;;  %v1223_v46 = vsel %vm396_vm2, %v1214_v28, %v1206_v36  ;;  %2183 = vmatpush1.bf16.msra.mxu1 %v2182_v47  ;;  %v1337_v47 = vld [vmem:[#allocation6 + $0x5] ss:$8 sm:$0x3]  ;;  %v1334_v28 = vsel %vm512_vm4, %v3354_v57, %v3350_v10 }
 0x399   : > { %v1216_v12 = vpop.permute.xlu0 %1215  ;;  %2185 = vmatprep.subr.bf16.mxu1 %v2184_v63  ;;  %v1241_v5 = vmul.f32 %v1230_v7, %v1223_v46  ;;  %v1242_v15 = vmul.f32 %v1234_v6, %v1219_v42  ;;  %v1346_v63 = vrot.slane %v1337_v47, %v2938_v20  ;;  %v1333_v42 = vsel %vm512_vm4, %v3348_v8, %v3344_v53 }
 0x39a   : > { %v1220_v2 = vsel %vm396_vm2, %v1208_v43, %v1216_v12  ;;  %v1224_v3 = vsel %vm396_vm2, %v1216_v12, %v1208_v43  ;;  %v1342_v46 = vrot.slane %v1337_v47, %v2944_v21 }
 0x39b   : > { %v1243_v62 = vmul.f32 %v1230_v7, %v1224_v3  ;;  %v1244_v37 = vmul.f32 %v1234_v6, %v1220_v2  ;;  %v1258_v39 = vpop.permute.xlu1 %1257  ;;  %v1352_v1 = vmul.f32 %v1346_v63, %v1334_v28  ;;  %v1350_v13 = vmul.f32 %v1346_v63, %v1333_v42  ;;  %v1389_v3 = vld [vmem:[#allocation6 + $0x6] ss:$8 sm:$0x3] }
 0x39c   : > { %2187 = vmatpush1.bf16.msra.mxu1 %v2186_v40  ;;  %v2204_v40 = vpack.c.bf16 %v3243_v22, %v3239_v34  ;;  %v1351_v2 = vmul.f32 %v1342_v46, %v1330_v11  ;;  %v1349_v60 = vmul.f32 %v1342_v46, %v1329_v44  ;;  %v1386_v34 = vsel %vm566_vm5, %v3370_v4, %v3359_v61 }
 0x39d   : > { %v1260_v17 = vpop.permute.xlu0 %1259  ;;  %v2188_v23 = vpack.c.bf16 %v1244_v37, %v1242_v15  ;;  %v2190_v24 = vpack.c.bf16 %v1243_v62, %v1241_v5  ;;  %v2208_v57 = vpack.c.bf16 %v1352_v1, %v1350_v13  ;;  %v1398_v5 = vrot.slane %v1389_v3, %v2938_v20 }
 0x39e   : > { %v1394_v15 = vrot.slane %v1389_v3, %v2944_v21  ;;  %v2210_v62 = vpack.c.bf16 %v1351_v2, %v1349_v60  ;;  %v1382_v37 = vsel %vm566_vm5, %v3359_v61, %v3370_v4 }
 0x39f   : > { %2189 = vmatprep.subr.bf16.mxu1 %v2188_v23  ;;  %v1266_v26 = vpop.permute.xlu1 %1265 }
 0x3a0   : > { %v1271_v6 = vsel %vm450_vm3, %v1258_v39, %v1266_v26  ;;  %v1275_v7 = vsel %vm450_vm3, %v1266_v26, %v1258_v39  ;;  %2191 = vmatpush1.bf16.msra.mxu1 %v2190_v24  ;;  %v1404_v39 = vmul.f32 %v1398_v5, %v1386_v34  ;;  %v1381_v26 = vsel %vm566_vm5, %v3352_v56, %v3356_v14 }
 0x3a1   : > { %v1268_v33 = vpop.permute.xlu0 %1267  ;;  %2193 = vmatprep.subr.bf16.mxu1 %v2192_v30  ;;  %v1293_v35 = vmul.f32 %v1282_v16, %v1275_v7  ;;  %v1294_v36 = vmul.f32 %v1286_v0, %v1271_v6  ;;  %v1402_v30 = vmul.f32 %v1398_v5, %v1385_v18  ;;  %v1403_v61 = vmul.f32 %v1394_v15, %v1382_v37  ;;  %v1441_v7 = vld [vmem:[#allocation6 + $0x7] ss:$8 sm:$0x3] }
 0x3a2   : > { %v1272_v49 = vsel %vm450_vm3, %v1260_v17, %v1268_v33  ;;  %v1276_v51 = vsel %vm450_vm3, %v1268_v33, %v1260_v17  ;;  %v1401_v33 = vmul.f32 %v1394_v15, %v1381_v26  ;;  %v1450_v14 = vrot.slane %v1441_v7, %v2938_v20 }
 0x3a3   : > { %v1295_v38 = vmul.f32 %v1282_v16, %v1276_v51  ;;  %v1296_v41 = vmul.f32 %v1286_v0, %v1272_v49  ;;  %v3454_v48 = vpop.permute.xlu1 %1417 }
 0x3a4   : > { %2195 = vmatpush1.bf16.msra.mxu1 %v2194_v29 }
 0x3a5   : > { %v3456_v50 = vpop.permute.xlu0 %1419  ;;  %v2196_v43 = vpack.c.bf16 %v1296_v41, %v1294_v36  ;;  %v2198_v45 = vpack.c.bf16 %v1295_v38, %v1293_v35  ;;  %v2216_v35 = vpack.c.bf16 %v1404_v39, %v1402_v30  ;;  %v2218_v41 = vpack.c.bf16 %v1403_v61, %v1401_v33 }
 0x3a7   : > { %2197 = vmatprep.subr.bf16.mxu1 %v2196_v43  ;;  %v1318_v58 = vpop.permute.xlu1 %1317 }
 0x3a8   : > { %2199 = vmatpush1.bf16.msra.mxu1 %v2198_v45 }
 0x3a9   : > { %v3465_v0 = vpop.permute.xlu0 %1427  ;;  %2201 = vmatprep.subr.bf16.mxu1 %v2200_v32 }
 0x3aa   : > { %v1438_v36 = vsel %vm620_vm6, %v3465_v0, %v3456_v50 }
 0x3ab   : > { %v1326_v12 = vpop.permute.xlu1 %1325  ;;  %v1456_v1 = vmul.f32 %v1450_v14, %v1438_v36  ;;  %v2074_v36 = vld [vmem:[%s2925_s10 + $0xb0] sm:$0xff] }
 0x3ac   : > { %2203 = vmatpush1.bf16.msra.mxu1 %v2202_v59  ;;  %v1331_v53 = vsel %vm512_vm4, %v1318_v58, %v1326_v12  ;;  %v1335_v8 = vsel %vm512_vm4, %v1326_v12, %v1318_v58  ;;  %v1446_v59 = vrot.slane %v1441_v7, %v2944_v21 }
 0x3ad   : > { %v1320_v10 = vpop.permute.xlu0 %1319  ;;  %2205 = vmatprep.subr.bf16.mxu1 %v2204_v40  ;;  %v1353_v54 = vmul.f32 %v1342_v46, %v1331_v53  ;;  %v1354_v17 = vmul.f32 %v1346_v63, %v1335_v8 }
 0x3af   : > { %v1370_v22 = vpop.permute.xlu1 %1369 }
 0x3b0   : > { %2207 = vmatpush1.bf16.msra.mxu1 %v2206_v55 }
 0x3b1   : > { %v1328_v27 = vpop.permute.xlu0 %1327  ;;  %2209 = vmatprep.subr.bf16.mxu1 %v2208_v57 }
 0x3b2   : > { %v1332_v16 = vsel %vm512_vm4, %v1320_v10, %v1328_v27  ;;  %v1336_v52 = vsel %vm512_vm4, %v1328_v27, %v1320_v10 }
 0x3b3   : > { %v1355_v23 = vmul.f32 %v1342_v46, %v1332_v16  ;;  %v1356_v24 = vmul.f32 %v1346_v63, %v1336_v52  ;;  %v1378_v25 = vpop.permute.xlu1 %1377  ;;  %v1434_v46 = vsel %vm620_vm6, %v3456_v50, %v3465_v0 }
 0x3b4   : > { %2211 = vmatpush1.bf16.msra.mxu1 %v2210_v62  ;;  %v1383_v49 = vsel %vm566_vm5, %v1370_v22, %v1378_v25  ;;  %v1387_v51 = vsel %vm566_vm5, %v1378_v25, %v1370_v22  ;;  %v1455_v3 = vmul.f32 %v1446_v59, %v1434_v46 }
 0x3b5   : > { %v1372_v4 = vpop.permute.xlu0 %1371  ;;  %v2212_v31 = vpack.c.bf16 %v1356_v24, %v1354_v17  ;;  %v2214_v6 = vpack.c.bf16 %v1355_v23, %v1353_v54  ;;  %v1405_v43 = vmul.f32 %v1394_v15, %v1383_v49  ;;  %v1406_v45 = vmul.f32 %v1398_v5, %v1387_v51  ;;  %v2064_v17 = vld [vmem:[%s2925_s10 + $0x60] sm:$0xff]  ;;  %v2071_v49 = vld [vmem:[%s2925_s10 + $0x98] sm:$0xff] }
 0x3b6   : > { %v2068_v24 = vld [vmem:[%s2925_s10 + $0x80] sm:$0xff] }
 0x3b7   : > { %2213 = vmatprep.subr.bf16.mxu1 %v2212_v31  ;;  %v1426_v29 = vpop.permute.xlu1 %1425  ;;  %v2067_v31 = vld [vmem:[%s2925_s10 + $0x78] sm:$0xff] }
 0x3b8   : > { %v1437_v56 = vsel %vm620_vm6, %v1426_v29, %v3454_v48  ;;  %2215 = vmatpush1.bf16.msra.mxu1 %v2214_v6  ;;  %v1433_v32 = vsel %vm620_vm6, %v3454_v48, %v1426_v29 }
 0x3b9   : > { %v1380_v38 = vpop.permute.xlu0 %1379  ;;  %2217 = vmatprep.subr.bf16.mxu1 %v2216_v35  ;;  %v1454_v28 = vmul.f32 %v1450_v14, %v1437_v56  ;;  %v1453_v13 = vmul.f32 %v1446_v59, %v1433_v32  ;;  %v2070_v56 = vld [vmem:[%s2925_s10 + $0x90] sm:$0xff]  ;;  %v2073_v32 = vld [vmem:[%s2925_s10 + $0xa8] sm:$0xff] }
 0x3ba   : > { %v1384_v47 = vsel %vm566_vm5, %v1372_v4, %v1380_v38  ;;  %v1388_v58 = vsel %vm566_vm5, %v1380_v38, %v1372_v4 }
 0x3bb   : > { %v1407_v63 = vmul.f32 %v1394_v15, %v1384_v47  ;;  %v1408_v42 = vmul.f32 %v1398_v5, %v1388_v58  ;;  %v1422_v11 = vpop.permute.xlu1 %1421  ;;  %v2224_v48 = vpack.c.bf16 %v1456_v1, %v1454_v28  ;;  %v2226_v34 = vpack.c.bf16 %v1455_v3, %v1453_v13  ;;  %v1493_v15 = vld [vmem:[#allocation6 + $0x10] ss:$8 sm:$0x3] }
 0x3bc   : > { %2219 = vmatpush1.bf16.msra.mxu1 %v2218_v41  ;;  %v1498_v37 = vrot.slane %v1493_v15, %v2944_v21  ;;  %v1502_v39 = vrot.slane %v1493_v15, %v2938_v20 }
 0x3bd   : > { %v1424_v12 = vpop.permute.xlu0 %1423  ;;  %v2220_v40 = vpack.c.bf16 %v1408_v42, %v1406_v45  ;;  %v2222_v44 = vpack.c.bf16 %v1407_v63, %v1405_v43  ;;  %v2066_v42 = vld [vmem:[%s2925_s10 + $0x70] sm:$0xff] }
 0x3bf   : > { %2221 = vmatprep.subr.bf16.mxu1 %v2220_v40  ;;  %v1430_v2 = vpop.permute.xlu1 %1429 }
 0x3c0   : > { %v1435_v10 = vsel %vm620_vm6, %v1422_v11, %v1430_v2  ;;  %v1439_v55 = vsel %vm620_vm6, %v1430_v2, %v1422_v11  ;;  %2223 = vmatpush1.bf16.msra.mxu1 %v2222_v44  ;;  %v2072_v11 = vld [vmem:[%s2925_s10 + $0xa0] sm:$0xff] }
 0x3c1   : > { %v1432_v60 = vpop.permute.xlu0 %1431  ;;  %2225 = vmatprep.subr.bf16.mxu1 %v2224_v48  ;;  %v1457_v22 = vmul.f32 %v1446_v59, %v1435_v10  ;;  %v1458_v57 = vmul.f32 %v1450_v14, %v1439_v55 }
 0x3c2   : > { %v1436_v50 = vsel %vm620_vm6, %v1424_v12, %v1432_v60  ;;  %v1440_v0 = vsel %vm620_vm6, %v1432_v60, %v1424_v12 }
 0x3c3   : > { %v1459_v5 = vmul.f32 %v1446_v59, %v1436_v50  ;;  %v1460_v53 = vmul.f32 %v1450_v14, %v1440_v0  ;;  %v1470_v8 = vpop.permute.xlu1 %1469  ;;  %v2075_v59 = vld [vmem:[%s2925_s10 + $0xb8] sm:$0xff]  ;;  %s2576_s10 = smov [#allocation8]  }
 0x3c4   : > { %2227 = vmatpush1.bf16.msra.mxu1 %v2226_v34  ;;  %s2462_s11 = sshll.u32 %s2576_s10, 4  ;;  %s2463_s11 = int_to_ptr.vmem [resolvable:$false] %s2462_s11 }
 0x3c5   : > { %v1472_v18 = vpop.permute.xlu0 %1471  ;;  %v2228_v27 = vpack.c.bf16 %v1460_v53, %v1458_v57  ;;  %v2230_v62 = vpack.c.bf16 %v1459_v5, %v1457_v22  ;;  %s2464_s13 = scalar_lea.vmem %s2463_s11, 2048  ;;  %p2465_p13 = scmp.lt.s32.totalorder %s3650_s29, %s2463_s11 }
 0x3c6   : > { %p2466_p3 = scmp.lt.s32.totalorder %s2464_s13, %s2458_s30 }
 0x3c7   : > { %2229 = vmatprep.subr.bf16.mxu1 %v2228_v27  ;;  %v1478_v16 = vpop.permute.xlu1 %1477 }
 0x3c8   : > { %v1485_v52 = vsel %vm674_vm7, %v1470_v8, %v1478_v16  ;;  %v1489_v54 = vsel %vm674_vm7, %v1478_v16, %v1470_v8  ;;  %2231 = vmatpush1.bf16.msra.mxu1 %v2230_v62  ;;  %p2467_p7 = por %p2466_p3, %p2465_p13 }
 0x3c9   : > { %v1480_v23 = vpop.permute.xlu0 %1479  ;;  %v1505_v20 = vmul.f32 %v1498_v37, %v1485_v52  ;;  %v1506_v26 = vmul.f32 %v1502_v39, %v1489_v54 }
 0x3ca   : > { %v1486_v25 = vsel %vm674_vm7, %v1472_v18, %v1480_v23  ;;  %v1490_v21 = vsel %vm674_vm7, %v1480_v23, %v1472_v18  ;;  %p2468_p1 = pnand %p2467_p7, %p2461_p12 }
 0x3cb   : > { %v1507_v30 = vmul.f32 %v1498_v37, %v1486_v25  ;;  %v1508_v61 = vmul.f32 %v1502_v39, %v1490_v21  ;;  %1712 = vmatmul.mubr.f32.vlgmr.msra.gmra.mrb[0].mxu1 %v2064_v17  ;;  %v1474_v4 = vpop.permute.xlu1 %1473 }
 0x3cc   : > { %1717 = vmatprep.mubr.f32.mxu1 %v2068_v24 }
 0x3cd   : > { %v2234_v6 = vpack.c.bf16 %v1507_v30, %v1505_v20  ;;  %v1476_v7 = vpop.permute.xlu0 %1475  ;;  %v2232_v33 = vpack.c.bf16 %v1508_v61, %v1506_v26 }
 0x3cf   : > { %1718 = vmatmul.mubr.f32.gmra.mrb[2].mxu1 %v2067_v31  ;;  %2233 = vmatprep.subr.bf16.mxu1 %v2232_v33  ;;  %v1482_v51 = vpop.permute.xlu1 %1481 }
 0x3d0   : > { %v1487_v29 = vsel %vm674_vm7, %v1474_v4, %v1482_v51  ;;  %v1491_v35 = vsel %vm674_vm7, %v1482_v51, %v1474_v4  ;;  %2235 = vmatpush1.bf16.msra.mxu1 %v2234_v6  ;;  %1723 = vmatprep.mubr.f32.mxu1 %v2071_v49 }
 0x3d1   : > { %v1484_v14 = vpop.permute.xlu0 %1483  ;;  %v1509_v43 = vmul.f32 %v1498_v37, %v1487_v29  ;;  %v1510_v45 = vmul.f32 %v1502_v39, %v1491_v35 }
 0x3d2   : > { %v1488_v38 = vsel %vm674_vm7, %v1476_v7, %v1484_v14  ;;  %v1492_v41 = vsel %vm674_vm7, %v1484_v14, %v1476_v7 }
 0x3d3   : > { %v1511_v47 = vmul.f32 %v1498_v37, %v1488_v38  ;;  %v1512_v58 = vmul.f32 %v1502_v39, %v1492_v41  ;;  %1724 = vmatmul.mubr.f32.gmra.mrb[4].mxu1 %v2070_v56 }
 0x3d4   : > { %1729 = vmatprep.mubr.f32.mxu1 %v2074_v36 }
 0x3d5   : > { %v2238_v28 = vpack.c.bf16 %v1511_v47, %v1509_v43  ;;  %v2236_v63 = vpack.c.bf16 %v1512_v58, %v1510_v45 }
 0x3d7   : > { %1730 = vmatmul.mubr.f32.gmra.mrb[6].mxu1 %v2073_v32  ;;  %2237 = vmatprep.subr.bf16.mxu1 %v2236_v63 }
 0x3d8   : > { %2239 = vmatpush1.bf16.msra.mxu1 %v2238_v28  ;;  %1800 = vmatprep.mubr.f32.mxu1 %v2575_v9 }
 0x3db   : > { %2082 = vmatmul.mubr.msk.f32.vlgmr.msra.gmra.mrb[0].mxu1 %vm826_vm8, %v2066_v42 }
 0x3dc   : > { %1806 = vmatprep.mubr.f32.mxu1 %v2575_v9 }
 0x3df   : > { %2083 = vmatmul.mubr.msk.f32.gmra.mrb[2].mxu1 %vm826_vm8, %v2069_v19 }
 0x3e0   : > { %1812 = vmatprep.mubr.f32.mxu1 %v2575_v9  ;;  %v1618_v46 = vpop.permute.xlu1 %1617 }
 0x3e2   : > { %v1623_v2 = vpop.permute.xlu0 %1622 }
 0x3e3   : > { %2084 = vmatmul.mubr.msk.f32.gmra.mrb[4].mxu1 %vm826_vm8, %v2072_v11 }
 0x3e4   : > { %1818 = vmatprep.mubr.f32.mxu1 %v2575_v9  ;;  %v1628_v57 = vpop.permute.xlu1 %1627 }
 0x3e6   : > { %v1633_v27 = vpop.permute.xlu0 %1632 }
 0x3e7   : > { %2085 = vmatmul.mubr.msk.f32.gmra.mrb[6].mxu1 %vm826_vm8, %v2075_v59 }
 0x4ae   : > { %v1802_v1 = vpop.f32.mrb[0].mxu1 }
 0x4af   : > { %v3581_v12 = vadd.f32 %v1802_v1, %v1618_v46  ;;  %v1804_v40 = vpop.f32.mrb[1].mxu1 }
 0x4b0   : > { %v3583_v44 = vadd.f32 %v1804_v40, %v1618_v46 }
 0x4b1   : > { %v1841_v13 = vmul.f32 %v3581_v12, %v3581_v12 }
 0x4b2   : > { %v1842_v48 = vmul.f32 %v3583_v44, %v3583_v44  ;;  %v1808_v3 = vpop.f32.mrb[2].mxu1  ;;  %v1825_v9 = vadd.f32 %v3583_v44, %v3581_v12 }
 0x4b3   : > { %v3591_v10 = vadd.f32 %v1808_v3, %v1623_v2  ;;  %v1810_v55 = vpop.f32.mrb[3].mxu1 }
 0x4b4   : > { %v3593_v60 = vadd.f32 %v1810_v55, %v1623_v2  ;;  %1826 = vadd.xlane.f32.xlu1 %v1825_v9  ;;  %v1849_v50 = vadd.f32 %v1842_v48, %v1841_v13  ;;  %v2392_v9 = vld [vmem:[%s2782_s3] sm:$0xff] }
 0x4b5   : > { %v1843_v0 = vmul.f32 %v3591_v10, %v3591_v10 }
 0x4b6   : > { %v1844_v34 = vmul.f32 %v3593_v60, %v3593_v60  ;;  %v1814_v22 = vpop.f32.mrb[4].mxu1  ;;  %1850 = vadd.xlane.f32.xlu0 %v1849_v50  ;;  %v1828_v15 = vadd.f32 %v3593_v60, %v3591_v10  ;;  %v2393_v50 = vld [vmem:[%s2782_s3 + $0x8] sm:$0xff] }
 0x4b7   : > { %v1816_v5 = vpop.f32.mrb[5].mxu1  ;;  %v3599_v53 = vadd.f32 %v1814_v22, %v1628_v57 }
 0x4b8   : > { %v3601_v8 = vadd.f32 %v1816_v5, %v1628_v57  ;;  %v1852_v18 = vadd.f32 %v1844_v34, %v1843_v0 }
 0x4b9   : > { %v1845_v16 = vmul.f32 %v3599_v53, %v3599_v53 }
 0x4ba   : > { %v1820_v62 = vpop.f32.mrb[6].mxu1  ;;  %1829 = vadd.xlane.f32.xlu0 %v1828_v15  ;;  %1853 = vadd.xlane.f32.xlu1 %v1852_v18  ;;  %v1846_v52 = vmul.f32 %v3601_v8, %v3601_v8  ;;  %v1831_v17 = vadd.f32 %v3601_v8, %v3599_v53  ;;  %v2394_v18 = vld [vmem:[%s2782_s3 + $0x10] sm:$0xff] }
 0x4bb   : > { %v3605_v37 = vadd.f32 %v1820_v62, %v1633_v27  ;;  %v1822_v39 = vpop.f32.mrb[7].mxu1  ;;  %v2395_v62 = vld [vmem:[%s2782_s3 + $0x18] sm:$0xff] }
 0x4bc   : > { %v3611_v54 = vadd.f32 %v1822_v39, %v1633_v27  ;;  %v1855_v21 = vadd.f32 %v1846_v52, %v1845_v16 }
 0x4bd   : > { %v1847_v23 = vmul.f32 %v3605_v37, %v3605_v37 }
 0x4be   : > { %v1848_v24 = vmul.f32 %v3611_v54, %v3611_v54  ;;  %1832 = vadd.xlane.f32.xlu0 %v1831_v17  ;;  %v1834_v25 = vadd.f32 %v3611_v54, %v3605_v37 }
 0x4c0   : > { %1835 = vadd.xlane.f32.xlu1 %v1834_v25  ;;  %v1858_v20 = vadd.f32 %v1848_v24, %v1847_v23 }
 0x4c2   : > { %1856 = vadd.xlane.f32.xlu0 %v1855_v21 }
 0x4c4   : > { %1859 = vadd.xlane.f32.xlu1 %v1858_v20 }
 0x541   : > { %v1827_v26 = vpop.xlane.xlu1 %1826 }
 0x542   : > { %v1837_v30 = vmul.f32 0.00390625, %v1827_v26 }
 0x543   : > { %v1851_v61 = vpop.xlane.xlu0 %1850 }
 0x544   : > { %v1861_v4 = vmul.f32 0.00390625, %v1851_v61  ;;  %v1865_v31 = vmul.f32 %v1837_v30, %v1837_v30  ;;  %v1873_v19 = vsub.f32 %v3581_v12, %v1837_v30  ;;  %v1874_v11 = vsub.f32 %v3583_v44, %v1837_v30  ;;  %v2397_v30 = vld [vmem:[%s2782_s3 + $0x28] sm:$0xff] }
 0x546   : > { %v1869_v6 = vsub.f32 %v1861_v4, %v1865_v31  ;;  %v2398_v31 = vld [vmem:[%s2782_s3 + $0x30] sm:$0xff] }
 0x547   : > { %v1830_v7 = vpop.xlane.xlu0 %1829  ;;  %v1854_v33 = vpop.xlane.xlu1 %1853 }
 0x548   : > { %v1881_v49 = vadd.f32 1e-05, %v1869_v6  ;;  %v1838_v51 = vmul.f32 0.00390625, %v1830_v7  ;;  %v1862_v35 = vmul.f32 0.00390625, %v1854_v33  ;;  %v2399_v7 = vld [vmem:[%s2782_s3 + $0x38] sm:$0xff] }
 0x54a   : > { %2384 = vrsqrt.f32 %v1881_v49  ;;  %v1866_v29 = vmul.f32 %v1838_v51, %v1838_v51  ;;  %v1875_v44 = vsub.f32 %v3591_v10, %v1838_v51  ;;  %v1876_v0 = vsub.f32 %v3593_v60, %v1838_v51 }
 0x54b   : > { %v1833_v56 = vpop.xlane.xlu0 %1832 }
 0x54c   : > { %v1870_v14 = vsub.f32 %v1862_v35, %v1866_v29  ;;  %v1839_v36 = vmul.f32 0.00390625, %v1833_v56 }
 0x54d   : > { %v1836_v38 = vpop.xlane.xlu1 %1835 }
 0x54e   : > { %v1882_v41 = vadd.f32 1e-05, %v1870_v14  ;;  %v1840_v43 = vmul.f32 0.00390625, %v1836_v38  ;;  %v1867_v47 = vmul.f32 %v1839_v36, %v1839_v36  ;;  %v1877_v16 = vsub.f32 %v3599_v53, %v1839_v36 }
 0x54f   : > { %v1857_v45 = vpop.xlane.xlu0 %1856  ;;  %v1878_v10 = vsub.f32 %v3601_v8, %v1839_v36  ;;  %v2396_v8 = vld [vmem:[%s2782_s3 + $0x20] sm:$0xff] }
 0x550   : > { %2386 = vrsqrt.f32 %v1882_v41  ;;  %v1863_v58 = vmul.f32 0.00390625, %v1857_v45  ;;  %v1868_v63 = vmul.f32 %v1840_v43, %v1840_v43  ;;  %v1879_v52 = vsub.f32 %v3605_v37, %v1840_v43 }
 0x551   : > { %v1860_v32 = vpop.xlane.xlu1 %1859  ;;  %v1880_v17 = vsub.f32 %v3611_v54, %v1840_v43 }
 0x552   : > { %v1871_v28 = vsub.f32 %v1863_v58, %v1867_v47  ;;  %v1864_v42 = vmul.f32 0.00390625, %v1860_v32 }
 0x554   : > { %v2385_v59 = vpop.eup %2384  ;;  %v1883_v46 = vadd.f32 1e-05, %v1871_v28  ;;  %v1872_v1 = vsub.f32 %v1864_v42, %v1868_v63 }
 0x555   : > { %v1889_v40 = vmul.f32 %v2385_v59, %v1873_v19  ;;  %v1890_v13 = vmul.f32 %v2385_v59, %v1874_v11 }
 0x556   : > { %2388 = vrsqrt.f32 %v1883_v46  ;;  %v1884_v2 = vadd.f32 1e-05, %v1872_v1 }
 0x557   : > { %v1897_v48 = vmul.f32 0.1, %v1889_v40  ;;  %v1898_v3 = vmul.f32 0.1, %v1890_v13 }
 0x558   : > { %2390 = vrsqrt.f32 %v1884_v2 }
 0x559   : > { %v1905_v55 = vadd.f32 %v2392_v9, %v1897_v48  ;;  %v1906_v12 = vadd.f32 %v2393_v50, %v1898_v3 }
 0x55a   : > { %v2387_v34 = vpop.eup %2386 }
 0x55b   : > { %1913 = vst [vmem:[%s2782_s3] sm:$0xff] %v1905_v55  ;;  %1914 = vst [vmem:[%s2782_s3 + $0x8] sm:$0xff] %v1906_v12  ;;  %v1891_v22 = vmul.f32 %v2387_v34, %v1875_v44  ;;  %v1892_v57 = vmul.f32 %v2387_v34, %v1876_v0 }
 0x55d   : > { %v1899_v5 = vmul.f32 0.1, %v1891_v22  ;;  %v1900_v15 = vmul.f32 0.1, %v1892_v57 }
 0x55f   : > { %v1907_v27 = vadd.f32 %v2394_v18, %v1899_v5  ;;  %v1908_v39 = vadd.f32 %v2395_v62, %v1900_v15 }
 0x560   : > { %v2389_v60 = vpop.eup %2388 }
 0x561   : > { %1915 = vst [vmem:[%s2782_s3 + $0x10] sm:$0xff] %v1907_v27  ;;  %1916 = vst [vmem:[%s2782_s3 + $0x18] sm:$0xff] %v1908_v39  ;;  %v1893_v23 = vmul.f32 %v2389_v60, %v1877_v16  ;;  %v1894_v24 = vmul.f32 %v2389_v60, %v1878_v10 }
 0x562   : > { %v2391_v25 = vpop.eup %2390 }
 0x563   : > { %v1901_v21 = vmul.f32 0.1, %v1893_v23  ;;  %v1902_v20 = vmul.f32 0.1, %v1894_v24  ;;  %v1895_v53 = vmul.f32 %v2391_v25, %v1879_v52  ;;  %v1896_v26 = vmul.f32 %v2391_v25, %v1880_v17 }
 0x565   : > { %v1909_v37 = vadd.f32 %v2396_v8, %v1901_v21  ;;  %v1910_v54 = vadd.f32 %v2397_v30, %v1902_v20  ;;  %v1903_v61 = vmul.f32 0.1, %v1895_v53  ;;  %v1904_v4 = vmul.f32 0.1, %v1896_v26 }
 0x567   : > { %1917 = vst [vmem:[%s2782_s3 + $0x20] sm:$0xff] %v1909_v37  ;;  %1918 = vst [vmem:[%s2782_s3 + $0x28] sm:$0xff] %v1910_v54  ;;  %v1911_v6 = vadd.f32 %v2398_v31, %v1903_v61  ;;  %v1912_v33 = vadd.f32 %v2399_v7, %v1904_v4 }
 0x569   : > { %1919 = vst [vmem:[%s2782_s3 + $0x30] sm:$0xff] %v1911_v6  ;;  %1920 = vst [vmem:[%s2782_s3 + $0x38] sm:$0xff] %v1912_v33 }
 0x56a   : > { %2471 = shalt.err (!%p2468_p1)
}
 0x56b   : > { %s2472_s3 = scalar_lea.hbm %s3644_s12, 1024  ;;  %s2476_s18 = scalar_lea.hbm %s3711_s4, 2048 }
 0x56c   : > { %p2473_p2 = scmp.ne.s32.totalorder %s3644_s12, %s2472_s3  ;;  %p2477_p9 = scmp.lt.u32.totalorder %s3644_s12, %s3711_s4 }
 0x56d   : > { %p2478_p6 = scmp.lt.u32.totalorder %s2476_s18, %s2472_s3  ;;  %p2480_p11 = scmp.lt.u32.totalorder %s2472_s3, %s3644_s12 }
 0x56e   : > { %p2474_p4 = pnand %p2473_p2, %p2709_p8 }
 0x56f   : > { %p2479_p0 = por %p2478_p6, %p2477_p9 }
 0x570   : > { %p2475_p5 = pneg %p2474_p4 }
 0x571   : > { %p2481_p10 = por %p2480_p11, %p2479_p0 }
 0x573   : > { %p2482_p12 = pnand %p2481_p10, %p2475_p5 }
 0x575   : > { %2485 = shalt.err (!%p2482_p12)
}
 0x576   : > { %s2577_s26 = smov 256  }
 0x577   : > { %2278 = dma.vmem_to_hbm [thread:$0]  (%p2709_p8), %s3650_s29, 1024, %s3644_s12, %s1922_s19, %s2577_s26, %s2577_s26, %s2567_s27  }
 0x578 PF: > { %p2295_p13 = scmp.ge.s32.totalorder %s2560_s22, 2  ;;  %s1950_s30 = sand.u32 1, %s2532_s15  }
 0x579   : > { %p3737_p3 = scmp.ne.s32.totalorder %s3724_s28, 0  ;;  %s1951_s10 = scalar_lea.sflag [#allocation5], %s1950_s30 }
 0x57b   : > { %p2289_p7 = pnand %p2295_p13, %p3737_p3 }
 0x57d   : > { %2527 = dma.done.wait (!%p2289_p7), %s1951_s10, 1024  }
 0x57e   : > { %2529 = vsyncadd (!%p2289_p7), %s1951_s10, 4294966272  ;;  %s21_s22 = sadd.s32 1, %s2560_s22   ;;  %s3738_s15 = smov %s2536_s16 }
 0x57f   : > { %p18_p1 = scmp.ge.s32.totalorder %s21_s22, 6   ;;  %s3739_s16 = smov %s2540_s17 }
 0x580   : > { %s3740_s17 = smov %s2726_s24  ;;  %s3741_s18 = smov %s2552_s20 }
 0x581   : > { %s3742_s19 = smov %s2556_s21  ;;  %s3743_s20 = smov %s3746_s8 }
 0x582   : > { %s3744_s21 = smov %s3750_s9  ;;  %20 = sbr.rel (!%p18_p1) target bundleno = 10 (0xa), region = 100 }
 0x589   :  { %1956 = vsyncpa [#allocation4], 1 }
 0x58a   :  { %1958 = vsyncpa [#allocation4 + $0x1], 1 }
 0x58b   :  { %1959 = vsyncpa [#allocation7], 1 }
 0x58c   :  { %1960 = vsyncpa [#allocation5], 1 }
 0x58d   :  { %1962 = vsyncpa [#allocation5 + $0x1], 1 }

</bundles_post_ra>
